<compile_context>
chip_gen: v7x
topology: tpu7x:2x2x1
jax: 0.10.0
libtpu: 0.0.40
codegen_flags: <defaults>
</compile_context>

<pallas_src>
import jax
import jax.numpy as jnp
from jax import lax
from jax.experimental import pallas as pl
from jax.experimental.pallas import tpu as pltpu

# ---- model / problem constants ----------------------------------------------
N_NODES = 16          # nodes per graph
IN_CH   = 8
HID     = 8           # gat1 per-head channels
HEADS   = 2
OUT_CH  = 4
OUT_PAD = 128         # lane-dense layer-2 width; lane OUT_PAD-1 carries a_dst2
N_EDGES = 40          # random edges per graph

GRAPHS_PER_BLOCK = 8              # graphs packed per grid step -> 128 MXU rows
GN = GRAPHS_PER_BLOCK * N_NODES   # 128 node rows per grid block
B_GRAPHS = 16                     # total graphs per call  (grid = B/G = 2)

NEG_INF = -1e9

# slab-A row layout (all small layer-1 params + src projections in one slab)
_R_W1   = 0                           # rows [0, 8)  : w1_aug  (IN_CH, H*HID+H)
_R_SRC1 = IN_CH                       # rows [8, 10) : src_p1  (H, IN_CH)
_R_B1   = IN_CH + HEADS               # row  10      : b1      (1, H*HID)
_R_HSEL = IN_CH + HEADS + 1           # rows [11,13) : hsel1   (H, H*HID)
_R_SRC2 = IN_CH + HEADS + 1 + HEADS   # row  13      : src_p2  (1, H*HID)
PA_ROWS = 16
PA_COLS = HEADS * HID + HEADS         # 18


# ----------------------------- Pallas kernel ---------------------------------
def _masked_softmax(raw, bias):
    """Row softmax of LeakyReLU(raw, 0.2) + additive mask bias (0 / -1e9)."""
    e = jnp.where(raw > 0, raw, 0.2 * raw) + bias
    m = jnp.max(e, axis=-1, keepdims=True)
    p = jnp.exp(e - m)                               # masked entries underflow to 0
    denom = jnp.sum(p, axis=-1, keepdims=True)
    return p * pl.reciprocal(denom, approx=True)     # EUP vrcp, off the VPU


def geogat_kernel(x_ref, bias_ref, pa_ref, pb_ref, out_ref):
    x = x_ref[...]                                   # (GN, IN_CH)
    bias_stack = bias_ref[...]                       # (HEADS*GN, GN) additive mask

    # Static slab views (2 packed param DMAs instead of 9 tiny ones).
    w1_aug = pa_ref[_R_W1:_R_W1 + IN_CH, :]                     # (IN_CH, H*HID+H)
    src_p1 = pa_ref[_R_SRC1:_R_SRC1 + HEADS, 0:IN_CH]           # (H, IN_CH)
    b1     = pa_ref[_R_B1:_R_B1 + 1, 0:HEADS * HID]             # (1, H*HID)
    hsel1  = pa_ref[_R_HSEL:_R_HSEL + HEADS, 0:HEADS * HID]     # (H, H*HID)
    src_p2 = pa_ref[_R_SRC2:_R_SRC2 + 1, 0:HEADS * HID]         # (1, H*HID)
    w2_aug = pb_ref[0:HEADS * HID, :]                           # (H*HID, OUT_PAD)
    b2     = pb_ref[HEADS * HID:HEADS * HID + 1, :]             # (1, OUT_PAD)

    # ---- layer 1: GATConv(IN_CH -> HID, heads=2, concat=True) + ReLU --------
    # a_src depends only on x -> overlaps with the feature matmul below.
    a_src = lax.dot_general(src_p1, x, (((1,), (1,)), ((), ())),
                            preferred_element_type=jnp.float32)          # (H, GN)
    h1_aug = jnp.dot(x, w1_aug, preferred_element_type=jnp.float32)      # (GN, H*HID+H)
    h1 = h1_aug[:, :HEADS * HID]                                         # (GN, H*HID)
    a_dst = h1_aug[:, HEADS * HID:]                                      # (GN, H)

    # One stacked softmax for both heads: rows [h*GN, (h+1)*GN) = head h.
    raw = jnp.concatenate(
        [a_dst[:, hd:hd + 1] + a_src[hd:hd + 1, :] for hd in range(HEADS)],
        axis=0)                                                          # (H*GN, GN)
    alpha = _masked_softmax(raw, bias_stack)                             # (H*GN, GN)

    # One aggregation matmul for both heads, then per-head lane select.
    g = jnp.dot(alpha, h1, preferred_element_type=jnp.float32)           # (H*GN, H*HID)
    z1 = b1
    for hd in range(HEADS):
        z1 = z1 + g[hd * GN:(hd + 1) * GN, :] * hsel1[hd:hd + 1, :]
    z1 = jnp.maximum(z1, 0.0)                                            # (GN, H*HID)

    # ---- layer 2: GATConv(H*HID -> OUT_CH, heads=1, concat=False) -----------
    a_src2 = lax.dot_general(src_p2, z1, (((1,), (1,)), ((), ())),
                             preferred_element_type=jnp.float32)         # (1, GN)
    h2 = jnp.dot(z1, w2_aug, preferred_element_type=jnp.float32)         # (GN, OUT_PAD)
    a_dst2 = h2[:, OUT_PAD - 1:OUT_PAD]                                  # folded proj
    alpha2 = _masked_softmax(a_dst2 + a_src2, bias_stack[:GN, :])        # (GN, GN)
    out_ref[...] = (jnp.dot(alpha2, h2, preferred_element_type=jnp.float32)
                    + b2)                                                # (GN, OUT_PAD)


# ------------------------------ host-side prep --------------------------------
def pack_params(params):
    """Fold attention projections into the feature matmuls and pack all params
    into two VMEM slabs.  Built ONCE, outside the per-call hot path."""
    w1, as1, ad1, b1 = params["w1"], params["as1"], params["ad1"], params["b1"]
    w2, as2, ad2, b2 = params["w2"], params["as2"], params["ad2"], params["b2"]

    adst1_blk = jnp.zeros((HEADS * HID, HEADS), jnp.float32)
    asrc1_blk = jnp.zeros((HEADS, HEADS * HID), jnp.float32)
    hsel1 = jnp.zeros((HEADS, HEADS * HID), jnp.float32)
    for hd in range(HEADS):
        adst1_blk = adst1_blk.at[hd * HID:(hd + 1) * HID, hd].set(ad1[hd])
        asrc1_blk = asrc1_blk.at[hd, hd * HID:(hd + 1) * HID].set(as1[hd])
        hsel1 = hsel1.at[hd, hd * HID:(hd + 1) * HID].set(1.0)

    w1_aug = jnp.concatenate([w1, w1 @ adst1_blk], axis=1)     # (IN_CH, H*HID+H)
    src_p1 = asrc1_blk @ w1.T                                  # (H, IN_CH)
    src_p2 = as2 @ w2.T                                        # (1, H*HID)

    pa = jnp.zeros((PA_ROWS, PA_COLS), jnp.float32)
    pa = pa.at[_R_W1:_R_W1 + IN_CH, :].set(w1_aug)
    pa = pa.at[_R_SRC1:_R_SRC1 + HEADS, 0:IN_CH].set(src_p1)
    pa = pa.at[_R_B1, 0:HEADS * HID].set(b1[0])
    pa = pa.at[_R_HSEL:_R_HSEL + HEADS, 0:HEADS * HID].set(hsel1)
    pa = pa.at[_R_SRC2, 0:HEADS * HID].set(src_p2[0])

    pb = jnp.zeros((HEADS * HID + 1, OUT_PAD), jnp.float32)
    pb = pb.at[0:HEADS * HID, 0:OUT_CH].set(w2)
    pb = pb.at[0:HEADS * HID, OUT_PAD - 1].set((w2 @ ad2.T)[:, 0])  # folded a_dst2
    pb = pb.at[HEADS * HID, 0:OUT_CH].set(b2[0])
    return pa, pb


def build_bias_blocks(masks):
    """Block-diagonal additive mask bias per grid block, stacked per head.
    masks: (B, N, N) with 1.0 on edges (incl. self loops)."""
    b = masks.shape[0]
    nb = b // GRAPHS_PER_BLOCK
    m = masks.reshape(nb, GRAPHS_PER_BLOCK, N_NODES, N_NODES).astype(jnp.float32)
    eye = jnp.eye(GRAPHS_PER_BLOCK, dtype=jnp.float32)
    blockdiag = jnp.einsum("bgij,gh->bgihj", m, eye).reshape(nb, GN, GN)
    bias = (1.0 - blockdiag) * NEG_INF            # 0 on edges, -1e9 everywhere else
    return jnp.tile(bias, (1, HEADS, 1))          # (nb, HEADS*GN, GN)


@jax.jit
def geogat_forward(x_blocks, bias_blocks, pa, pb):
    nb = x_blocks.shape[0]
    out = pl.pallas_call(
        geogat_kernel,
        out_shape=jax.ShapeDtypeStruct((nb, GN, OUT_PAD), jnp.float32),
        grid=(nb,),
        in_specs=[
            pl.BlockSpec((None, GN, IN_CH), lambda i: (i, 0, 0)),
            pl.BlockSpec((None, HEADS * GN, GN), lambda i: (i, 0, 0)),
            pl.BlockSpec((PA_ROWS, PA_COLS), lambda i: (0, 0)),
            pl.BlockSpec((HEADS * HID + 1, OUT_PAD), lambda i: (0, 0)),
        ],
        out_specs=pl.BlockSpec((None, GN, OUT_PAD), lambda i: (i, 0, 0)),
        compiler_params=pltpu.CompilerParams(dimension_semantics=("parallel",)),
    )(x_blocks, bias_blocks, pa, pb)
    return out[..., :OUT_CH]


# --------------------------- pure-JAX reference -------------------------------
def geogat_reference(x, mask, params):
    """Single-graph PyG GATConv reference (eval mode)."""
    neg = jnp.where(mask > 0, 0.0, NEG_INF)

    def layer(feat, w, att_s, att_d, bias, heads, cdim):
        h = feat @ w
        outs = []
        for hd in range(heads):
            hh = h[:, hd * cdim:(hd + 1) * cdim]
            a_s = jnp.sum(hh * att_s[hd][None, :], axis=-1, keepdims=True)
            a_d = jnp.sum(hh * att_d[hd][None, :], axis=-1, keepdims=True)
            e = a_d + a_s.T
            e = jnp.where(e > 0, e, 0.2 * e) + neg
            m = jnp.max(e, axis=-1, keepdims=True)
            p = jnp.exp(e - m) * mask
            alpha = p / jnp.sum(p, axis=-1, keepdims=True)
            outs.append(alpha @ hh)
        return jnp.concatenate(outs, axis=-1) + bias

    z = jnp.maximum(
        layer(x, params["w1"], params["as1"], params["ad1"], params["b1"],
              HEADS, HID), 0.0)
    return layer(z, params["w2"], params["as2"], params["ad2"], params["b2"],
                 1, OUT_CH)


# --------------------------------- main ---------------------------------------
if __name__ == "__main__":
    key = jax.random.PRNGKey(0)
    kx, ke, k1, k2, k3, k4, k5, k6, k7, k8 = jax.random.split(key, 10)

    # batch of graphs: node features + random edge lists
    x = jax.random.normal(kx, (B_GRAPHS, N_NODES, IN_CH), dtype=jnp.float32)
    edge_index = jax.random.randint(ke, (B_GRAPHS, 2, N_EDGES), 0, N_NODES)

    # dense per-graph masks: mask[target, source] = 1, plus self loops
    masks = jnp.zeros((B_GRAPHS, N_NODES, N_NODES), dtype=jnp.float32)
    bidx = jnp.arange(B_GRAPHS)[:, None]
    masks = masks.at[bidx, edge_index[:, 1, :], edge_index[:, 0, :]].set(1.0)
    diag = jnp.arange(N_NODES)
    masks = masks.at[:, diag, diag].set(1.0)

    # deterministic synthetic parameters (glorot-ish scaling)
    def glorot(k, shape):
        fan = sum(shape)
        return jax.random.normal(k, shape, dtype=jnp.float32) * jnp.sqrt(2.0 / fan)

    params = {
        "w1":  glorot(k1, (IN_CH, HEADS * HID)),
        "as1": glorot(k2, (HEADS, HID)),
        "ad1": glorot(k3, (HEADS, HID)),
        "b1":  0.1 * jax.random.normal(k4, (1, HEADS * HID), dtype=jnp.float32),
        "w2":  glorot(k5, (HEADS * HID, OUT_CH)),
        "as2": glorot(k6, (1, OUT_CH)),
        "ad2": glorot(k7, (1, OUT_CH)),
        "b2":  0.1 * jax.random.normal(k8, (1, OUT_CH), dtype=jnp.float32),
    }

    # one-time prep (hoisted out of the per-call hot path)
    pa, pb = pack_params(params)
    bias_blocks = build_bias_blocks(masks)
    x_blocks = x.reshape(B_GRAPHS // GRAPHS_PER_BLOCK, GN, IN_CH)

    out = geogat_forward(x_blocks, bias_blocks, pa, pb)
    out = jax.block_until_ready(out)
    out = out.reshape(B_GRAPHS, N_NODES, OUT_CH)

    ref = jax.vmap(lambda xg, mg: geogat_reference(xg, mg, params))(x, masks)

    assert out.shape == (B_GRAPHS, N_NODES, OUT_CH)
    assert jnp.all(jnp.isfinite(out))
    # tolerance relaxed to 2e-3 to accommodate pl.reciprocal(approx=True)
    assert jnp.allclose(out, ref, rtol=2e-3, atol=2e-3)

    print("KERNEL_OK")
</pallas_src>

<mosaic_0001>
module attributes {stable_mosaic.version = 11 : i64} {
  func.func @geogat_kernel(%arg0: i32, %arg1: memref<1x128x8xf32, #tpu.memory_space<vmem>>, %arg2: memref<1x256x128xf32, #tpu.memory_space<vmem>>, %arg3: memref<16x18xf32, #tpu.memory_space<vmem>>, %arg4: memref<17x128xf32, #tpu.memory_space<vmem>>, %arg5: memref<1x128x128xf32, #tpu.memory_space<vmem>>) attributes {dimension_semantics = [#tpu.dimension_semantics<parallel>], iteration_bounds = array<i64: 2>, scalar_prefetch = 0 : i64, scratch_operands = 0 : i64, tpu.core_type = #tpu.core_type<tc>, window_params = [{transform_indices = @transform_0, window_bounds = array<i64: 1, 128, 8>}, {transform_indices = @transform_1, window_bounds = array<i64: 1, 256, 128>}, {pipeline_mode = #tpu.pipeline_mode<synchronous>, transform_indices = @transform_2, window_bounds = array<i64: 16, 18>}, {pipeline_mode = #tpu.pipeline_mode<synchronous>, transform_indices = @transform_3, window_bounds = array<i64: 17, 128>}, {transform_indices = @transform_4, window_bounds = array<i64: 1, 128, 128>}]} {
    %c0 = arith.constant 0 : index
    %c0_0 = arith.constant 0 : index
    %c0_1 = arith.constant 0 : index
    %0 = vector.load %arg1[%c0, %c0_0, %c0_1] : memref<1x128x8xf32, #tpu.memory_space<vmem>>, vector<1x128x8xf32>
    %1 = vector.shape_cast %0 : vector<1x128x8xf32> to vector<128x8xf32>
    %c0_2 = arith.constant 0 : index
    %c0_3 = arith.constant 0 : index
    %c0_4 = arith.constant 0 : index
    %2 = vector.load %arg2[%c0_2, %c0_3, %c0_4] : memref<1x256x128xf32, #tpu.memory_space<vmem>>, vector<1x256x128xf32>
    %3 = vector.shape_cast %2 : vector<1x256x128xf32> to vector<256x128xf32>
    %c0_5 = arith.constant 0 : index
    %c0_6 = arith.constant 0 : index
    %4 = vector.load %arg3[%c0_5, %c0_6] : memref<16x18xf32, #tpu.memory_space<vmem>>, vector<8x18xf32>
    %c8 = arith.constant 8 : index
    %c0_7 = arith.constant 0 : index
    %5 = vector.load %arg3[%c8, %c0_7] : memref<16x18xf32, #tpu.memory_space<vmem>>, vector<2x8xf32>
    %c10 = arith.constant 10 : index
    %c0_8 = arith.constant 0 : index
    %6 = vector.load %arg3[%c10, %c0_8] : memref<16x18xf32, #tpu.memory_space<vmem>>, vector<1x16xf32>
    %c11 = arith.constant 11 : index
    %c0_9 = arith.constant 0 : index
    %7 = vector.load %arg3[%c11, %c0_9] : memref<16x18xf32, #tpu.memory_space<vmem>>, vector<2x16xf32>
    %c13 = arith.constant 13 : index
    %c0_10 = arith.constant 0 : index
    %8 = vector.load %arg3[%c13, %c0_10] : memref<16x18xf32, #tpu.memory_space<vmem>>, vector<1x16xf32>
    %c0_11 = arith.constant 0 : index
    %c0_12 = arith.constant 0 : index
    %9 = vector.load %arg4[%c0_11, %c0_12] : memref<17x128xf32, #tpu.memory_space<vmem>>, vector<16x128xf32>
    %c16 = arith.constant 16 : index
    %c0_13 = arith.constant 0 : index
    %10 = vector.load %arg4[%c16, %c0_13] : memref<17x128xf32, #tpu.memory_space<vmem>>, vector<1x128xf32>
    %cst = arith.constant dense<0.000000e+00> : vector<2x128xf32>
    %11 = tpu.matmul %5, %1, %cst {dimension_numbers = #tpu.dot_dimension_numbers<[1], [1], [0], [0], [0, 0, 1, 0], [], []>} : vector<2x8xf32>, vector<128x8xf32>, vector<2x128xf32> -> vector<2x128xf32>
    %cst_14 = arith.constant dense<0.000000e+00> : vector<128x18xf32>
    %12 = tpu.matmul %1, %4, %cst_14 {dimension_numbers = #tpu.dot_dimension_numbers<[1], [0], [0], [1], [0, 0, 1, 1], [], []>} : vector<128x8xf32>, vector<8x18xf32>, vector<128x18xf32> -> vector<128x18xf32>
    %13 = vector.extract_strided_slice %12 {offsets = [0, 0], sizes = [128, 16], strides = [1, 1]} : vector<128x18xf32> to vector<128x16xf32>
    %14 = vector.extract_strided_slice %12 {offsets = [0, 16], sizes = [128, 2], strides = [1, 1]} : vector<128x18xf32> to vector<128x2xf32>
    %15 = vector.extract_strided_slice %14 {offsets = [0, 0], sizes = [128, 1], strides = [1, 1]} : vector<128x2xf32> to vector<128x1xf32>
    %16 = vector.extract_strided_slice %11 {offsets = [0, 0], sizes = [1, 128], strides = [1, 1]} : vector<2x128xf32> to vector<1x128xf32>
    %17 = vector.broadcast %15 : vector<128x1xf32> to vector<128x128xf32>
    %18 = vector.broadcast %16 : vector<1x128xf32> to vector<128x128xf32>
    %19 = arith.addf %17, %18 : vector<128x128xf32>
    %20 = vector.extract_strided_slice %14 {offsets = [0, 1], sizes = [128, 1], strides = [1, 1]} : vector<128x2xf32> to vector<128x1xf32>
    %21 = vector.extract_strided_slice %11 {offsets = [1, 0], sizes = [1, 128], strides = [1, 1]} : vector<2x128xf32> to vector<1x128xf32>
    %22 = vector.broadcast %20 : vector<128x1xf32> to vector<128x128xf32>
    %23 = vector.broadcast %21 : vector<1x128xf32> to vector<128x128xf32>
    %24 = arith.addf %22, %23 : vector<128x128xf32>
    %25 = tpu.concatenate %19, %24 in 0 : vector<128x128xf32>, vector<128x128xf32> -> vector<256x128xf32>
    %cst_15 = arith.constant 0.000000e+00 : f32
    %26 = vector.broadcast %cst_15 : f32 to vector<256x128xf32>
    %27 = arith.cmpf ogt, %25, %26 : vector<256x128xf32>
    %cst_16 = arith.constant 2.000000e-01 : f32
    %28 = vector.broadcast %cst_16 : f32 to vector<256x128xf32>
    %29 = arith.mulf %28, %25 : vector<256x128xf32>
    %30 = arith.select %27, %25, %29 : vector<256x128xi1>, vector<256x128xf32>
    %31 = arith.addf %30, %3 : vector<256x128xf32>
    %cst_17 = arith.constant dense<0xFF800000> : vector<256xf32>
    %32 = vector.multi_reduction <maximumf>, %31, %cst_17 [1] : vector<256x128xf32> to vector<256xf32>
    %33 = vector.shape_cast %32 : vector<256xf32> to vector<256x1xf32>
    %34 = vector.broadcast %33 : vector<256x1xf32> to vector<256x128xf32>
    %35 = arith.subf %31, %34 : vector<256x128xf32>
    %36 = math.exp %35 : vector<256x128xf32>
    %cst_18 = arith.constant dense<0.000000e+00> : vector<256xf32>
    %37 = vector.multi_reduction <add>, %36, %cst_18 [1] : vector<256x128xf32> to vector<256xf32>
    %38 = vector.shape_cast %37 : vector<256xf32> to vector<256x1xf32>
    %39 = tpu.reciprocal %38 {approx = true} : vector<256x1xf32> -> vector<256x1xf32>
    %40 = vector.broadcast %39 : vector<256x1xf32> to vector<256x128xf32>
    %41 = arith.mulf %36, %40 : vector<256x128xf32>
    %cst_19 = arith.constant dense<0.000000e+00> : vector<256x16xf32>
    %42 = tpu.matmul %41, %13, %cst_19 {dimension_numbers = #tpu.dot_dimension_numbers<[1], [0], [0], [1], [0, 0, 1, 1], [], []>} : vector<256x128xf32>, vector<128x16xf32>, vector<256x16xf32> -> vector<256x16xf32>
    %43 = vector.extract_strided_slice %42 {offsets = [0, 0], sizes = [128, 16], strides = [1, 1]} : vector<256x16xf32> to vector<128x16xf32>
    %44 = vector.extract_strided_slice %7 {offsets = [0, 0], sizes = [1, 16], strides = [1, 1]} : vector<2x16xf32> to vector<1x16xf32>
    %45 = vector.broadcast %44 : vector<1x16xf32> to vector<128x16xf32>
    %46 = arith.mulf %43, %45 : vector<128x16xf32>
    %47 = vector.broadcast %6 : vector<1x16xf32> to vector<128x16xf32>
    %48 = arith.addf %47, %46 : vector<128x16xf32>
    %49 = vector.extract_strided_slice %42 {offsets = [128, 0], sizes = [128, 16], strides = [1, 1]} : vector<256x16xf32> to vector<128x16xf32>
    %50 = vector.extract_strided_slice %7 {offsets = [1, 0], sizes = [1, 16], strides = [1, 1]} : vector<2x16xf32> to vector<1x16xf32>
    %51 = vector.broadcast %50 : vector<1x16xf32> to vector<128x16xf32>
    %52 = arith.mulf %49, %51 : vector<128x16xf32>
    %53 = arith.addf %48, %52 : vector<128x16xf32>
    %cst_20 = arith.constant 0.000000e+00 : f32
    %54 = vector.broadcast %cst_20 : f32 to vector<128x16xf32>
    %55 = arith.maximumf %53, %54 : vector<128x16xf32>
    %cst_21 = arith.constant dense<0.000000e+00> : vector<1x128xf32>
    %56 = tpu.matmul %8, %55, %cst_21 {dimension_numbers = #tpu.dot_dimension_numbers<[1], [1], [0], [0], [0, 0, 1, 0], [], []>} : vector<1x16xf32>, vector<128x16xf32>, vector<1x128xf32> -> vector<1x128xf32>
    %cst_22 = arith.constant dense<0.000000e+00> : vector<128x128xf32>
    %57 = tpu.matmul %55, %9, %cst_22 {dimension_numbers = #tpu.dot_dimension_numbers<[1], [0], [0], [1], [0, 0, 1, 1], [], []>} : vector<128x16xf32>, vector<16x128xf32>, vector<128x128xf32> -> vector<128x128xf32>
    %58 = vector.extract_strided_slice %57 {offsets = [0, 127], sizes = [128, 1], strides = [1, 1]} : vector<128x128xf32> to vector<128x1xf32>
    %59 = vector.broadcast %58 : vector<128x1xf32> to vector<128x128xf32>
    %60 = vector.broadcast %56 : vector<1x128xf32> to vector<128x128xf32>
    %61 = arith.addf %59, %60 : vector<128x128xf32>
    %62 = vector.extract_strided_slice %3 {offsets = [0, 0], sizes = [128, 128], strides = [1, 1]} : vector<256x128xf32> to vector<128x128xf32>
    %cst_23 = arith.constant 0.000000e+00 : f32
    %63 = vector.broadcast %cst_23 : f32 to vector<128x128xf32>
    %64 = arith.cmpf ogt, %61, %63 : vector<128x128xf32>
    %cst_24 = arith.constant 2.000000e-01 : f32
    %65 = vector.broadcast %cst_24 : f32 to vector<128x128xf32>
    %66 = arith.mulf %65, %61 : vector<128x128xf32>
    %67 = arith.select %64, %61, %66 : vector<128x128xi1>, vector<128x128xf32>
    %68 = arith.addf %67, %62 : vector<128x128xf32>
    %cst_25 = arith.constant dense<0xFF800000> : vector<128xf32>
    %69 = vector.multi_reduction <maximumf>, %68, %cst_25 [1] : vector<128x128xf32> to vector<128xf32>
    %70 = vector.shape_cast %69 : vector<128xf32> to vector<128x1xf32>
    %71 = vector.broadcast %70 : vector<128x1xf32> to vector<128x128xf32>
    %72 = arith.subf %68, %71 : vector<128x128xf32>
    %73 = math.exp %72 : vector<128x128xf32>
    %cst_26 = arith.constant dense<0.000000e+00> : vector<128xf32>
    %74 = vector.multi_reduction <add>, %73, %cst_26 [1] : vector<128x128xf32> to vector<128xf32>
    %75 = vector.shape_cast %74 : vector<128xf32> to vector<128x1xf32>
    %76 = tpu.reciprocal %75 {approx = true} : vector<128x1xf32> -> vector<128x1xf32>
    %77 = vector.broadcast %76 : vector<128x1xf32> to vector<128x128xf32>
    %78 = arith.mulf %73, %77 : vector<128x128xf32>
    %cst_27 = arith.constant dense<0.000000e+00> : vector<128x128xf32>
    %79 = tpu.matmul %78, %57, %cst_27 {dimension_numbers = #tpu.dot_dimension_numbers<[1], [0], [0], [1], [0, 0, 1, 1], [], []>} : vector<128x128xf32>, vector<128x128xf32>, vector<128x128xf32> -> vector<128x128xf32>
    %80 = vector.broadcast %10 : vector<1x128xf32> to vector<128x128xf32>
    %81 = arith.addf %79, %80 : vector<128x128xf32>
    %c0_28 = arith.constant 0 : index
    %c0_29 = arith.constant 0 : index
    %c0_30 = arith.constant 0 : index
    %82 = vector.load %arg5[%c0_28, %c0_29, %c0_30] : memref<1x128x128xf32, #tpu.memory_space<vmem>>, vector<1x128x128xf32>
    %83 = vector.shape_cast %82 : vector<1x128x128xf32> to vector<128x128xf32>
    %84 = vector.shape_cast %81 : vector<128x128xf32> to vector<1x128x128xf32>
    tpu.vector_store %arg5[%c0_28, %c0_29, %c0_30], %84 {strides = array<i32>} : memref<1x128x128xf32, #tpu.memory_space<vmem>>, vector<1x128x128xf32>,
    return
  }
  func.func @transform_0(%arg0: i32) -> (i32, i32, i32) {
    %c0_i32 = arith.constant 0 : i32
    %c0_i32_0 = arith.constant 0 : i32
    %c0_i32_1 = arith.constant 0 : i32
    return %arg0, %c0_i32, %c0_i32_0 : i32, i32, i32
  }
  func.func @transform_1(%arg0: i32) -> (i32, i32, i32) {
    %c0_i32 = arith.constant 0 : i32
    %c0_i32_0 = arith.constant 0 : i32
    %c0_i32_1 = arith.constant 0 : i32
    return %arg0, %c0_i32, %c0_i32_0 : i32, i32, i32
  }
  func.func @transform_2(%arg0: i32) -> (i32, i32) {
    %c0_i32 = arith.constant 0 : i32
    %c0_i32_0 = arith.constant 0 : i32
    %c0_i32_1 = arith.constant 0 : i32
    return %c0_i32, %c0_i32_0 : i32, i32
  }
  func.func @transform_3(%arg0: i32) -> (i32, i32) {
    %c0_i32 = arith.constant 0 : i32
    %c0_i32_0 = arith.constant 0 : i32
    %c0_i32_1 = arith.constant 0 : i32
    return %c0_i32, %c0_i32_0 : i32, i32
  }
  func.func @transform_4(%arg0: i32) -> (i32, i32, i32) {
    %c0_i32 = arith.constant 0 : i32
    %c0_i32_0 = arith.constant 0 : i32
    %c0_i32_1 = arith.constant 0 : i32
    return %arg0, %c0_i32, %c0_i32_0 : i32, i32, i32
  }
}

</mosaic_0001>

<bundles_post_ra>
// kernel: geogat_forward.1
= control target key start
LH: loop header
LB: loop body
LE: loop exit
PB: predicated region body
PF: predicated region fallthrough
CT: control target
= control target key end

     0   :  { %9 = vsyncpa [#allocation3], 0  ;;  %s4158_s0 = inlined_call_operand.vmem [shape: f32[2,128,8], index: 0, kind: input, shape index: {}]   ;;  %s4159_s1 = inlined_call_operand.hbm [shape: f32[2,256,128], index: 1, kind: input, shape index: {}]   ;;  %s4160_s2 = inlined_call_operand.vmem [shape: f32[16,18], index: 2, kind: input, shape index: {}]   ;;  %s4161_s3 = inlined_call_operand.vmem [shape: f32[17,128], index: 3, kind: input, shape index: {}]   ;;  %s4162_s4 = inlined_call_operand.vmem [shape: f32[2,128,128], index: 4, kind: output, shape index: {}]  }
   0x1   :  { %11 = vsyncpa [#allocation3 + $0x1], 0  ;;  %s3288_s15 = smov 0   ;;  %s3290_s16 = smov 0  }
   0x2   :  { %s3292_s17 = smov 0   ;;  %s3294_s18 = smov 0  }
   0x3 LB: > { %s3307_s19 = sadd.s32 4294967295, %s3252_s18   ;;  %s3310_s20 = sadd.s32 1, %s3252_s18   ;;  %s3252_s18 = sphi %s3294_s18, %s4173_s18   ;;  %s3248_s17 = sphi %s3292_s17, %s4172_s17   ;;  %s3244_s16 = sphi %s3290_s16, %s4171_s16   ;;  %s3240_s15 = sphi %s3288_s15, %s4170_s15  }
   0x4   : > { %s47_s21 = ssub.s32 %s3252_s18, %s3310_s20  ;;  %s50_s22 = sadd.s32 1, %s3248_s17 }
   0x5   : > { %p48_p0 = scmp.eq.s32.totalorder %s47_s21, 0  ;;  %p57_p1 = scmp.ne.s32.totalorder %s3248_s17, %s3244_s16 }
   0x6   : > { %p58_p2 = scmp.eq.s32.totalorder %s3252_s18, 0  ;;  %p63_p3 = scmp.ne.s32.totalorder %s3244_s16, %s3240_s15 }
   0x7   : > { %s3320_s23 = scalar_select %p48_p0, %s3248_s17, %s50_s22  }
   0x8   : > { %p59_p4 = por %p58_p2, %p57_p1  ;;  %p64_p5 = scmp.eq.s32.totalorder %s3307_s19, 0 }
   0x9   : > { %p2929_p6 = scmp.lt.s32.totalorder %s3252_s18, 2  ;;  %s169_s25 = sand.u32 1, %s3248_s17  }
   0xa   : > { %p3324_p7 = por %p64_p5, %p63_p3  ;;  %s2300_s26 = sshll.u32 %s169_s25, 8 }
   0xb   : > { %s2379_s27 = sshll.u32 %s3252_s18, 12  ;;  %s173_s5 = scalar_lea.vmem [#allocation2], %s2300_s26 }
   0xc   : > { %s3333_s30 = scalar_lea.hbm %s4159_s1, %s2379_s27  ;;  %s180_s6 = sshll.u32 %s173_s5, 4  ;;  %s3335_s6 = int_to_ptr.vmem [resolvable:$true] %s180_s6 }
   0xd   : > { %p3337_p8 = pnand %p2929_p6, %p59_p4  ;;  %s3342_s8 = scalar_lea.sflag [#allocation3], %s169_s25 }
   0xe   : > { %s3188_s9 = scalar_lea.hbm %s3333_s30, 4096  ;;  %s3193_s12 = scalar_lea.hbm %s4159_s1, 8192 }
   0xf   : > { %p3189_p10 = scmp.ne.s32.totalorder %s3333_s30, %s3188_s9  ;;  %p3190_p11 = pneg %p3337_p8 }
  0x10   : > { %p3194_p0 = scmp.lt.u32.totalorder %s3333_s30, %s4159_s1  ;;  %p3195_p1 = scmp.lt.u32.totalorder %s3193_s12, %s3188_s9 }
  0x11   : > { %p3191_p12 = pnand %p3190_p11, %p3189_p10  ;;  %p3197_p3 = scmp.lt.u32.totalorder %s3188_s9, %s3333_s30 }
  0x12   : > { %p3196_p2 = por %p3195_p1, %p3194_p0 }
  0x13   : > { %p3192_p13 = pneg %p3191_p12 }
  0x14   : > { %p3198_p4 = por %p3197_p3, %p3196_p2 }
  0x16   : > { %p3199_p5 = pnand %p3198_p4, %p3192_p13 }
  0x18   : > { %3202 = shalt.err (!%p3199_p5)
}
  0x19   : > { %s3203_s15 = scalar_lea.vmem %s3335_s6, 4096  ;;  %s3254_s21 = smov [#allocation2]  }
  0x1a   : > { %p3204_p6 = scmp.ne.s32.totalorder %s3335_s6, %s3203_s15  ;;  %s3208_s22 = sshll.u32 %s3254_s21, 4  ;;  %s3209_s22 = int_to_ptr.vmem [resolvable:$false] %s3208_s22 }
  0x1b   : > { %s3210_s25 = scalar_lea.vmem %s3209_s22, 8192  ;;  %p3211_p9 = scmp.lt.s32.totalorder %s3335_s6, %s3209_s22 }
  0x1c   : > { %p3206_p10 = pnand %p3204_p6, %p3190_p11  ;;  %p3212_p0 = scmp.lt.s32.totalorder %s3210_s25, %s3203_s15 }
  0x1e   : > { %p3207_p12 = pneg %p3206_p10  ;;  %p3213_p1 = por %p3212_p0, %p3211_p9 }
  0x20   : > { %p3214_p2 = pnand %p3213_p1, %p3207_p12 }
  0x22   : > { %3217 = shalt.err (!%p3214_p2)
}
  0x23   : > { %s3255_s26 = smov 128   ;;  %s3256_s27 = smov 8  }
  0x24   : > { %2928 = dma.hbm_to_vmem [thread:$0]  (!%p3337_p8), %s3333_s30, 4096, %s3335_s6, %s3342_s8, %s3255_s26, %s3255_s26, %s3256_s27  }
  0x25   : > { %p188_p11 = scmp.lt.s32.totalorder %s3252_s18, 3  ;;  %p4165_p13 = scmp.ge.s32.totalorder %s3252_s18, 1 }
  0x27   : > { %p189_p3 = pnand %p4165_p13, %p188_p11 }
  0x28   : > { %s194_s28 = sand.u32 (!%p189_p3), 1, %s3244_s16  }
  0x29   : > { %192 = sbr.rel (%p189_p3) target bundleno = 1920 (0x780), region = 36  ;;  %s2304_s29 = sshll.u32 (!%p189_p3), %s194_s28, 8 }
  0x2a   : > { %s195_s5 = scalar_lea.sflag (!%p189_p3), [#allocation3], %s194_s28  ;;  %s3374_s9 = scalar_lea.vmem (!%p189_p3), [#allocation2], %s2304_s29 }
  0x30   : > { %3235 = dma.done.wait (%p3324_p7), %s195_s5, 4096  }
  0x31   : > { %3237 = vsyncadd (%p3324_p7), %s195_s5, 4294963200  ;;  %p228_p9 = scmp.lt.s32.totalorder %s3307_s19, 1  ;;  %v3257_v0 = vmov 0.0|0.0   ;;  %vm3258_vm0 = vmmov 0   ;;  %v3259_v1 = vmov 0.0   ;;  %v3260_v2 = vmov 17  }
  0x32   : > { %2791 = vmatprep.subr.bf16.mxu0 %v3257_v0  ;;  %2563 = vmatprep.mubr.msk.f32.mxu0 %vm3258_vm0, %v3259_v1  ;;  %v3261_v3 = vmov 16   ;;  %vm294_vm1 = vcmask 64512   ;;  %v286_v5 = vld [vmem:[%s4160_s2] sm:$0xff]  ;;  %v287_v30 = vld [vmem:[%s4160_s2 + $0x8] sm:$0x3]  ;;  %v641_v57 = vlaneseq }
  0x33   : > { %s4175_s19 = smov (!%p228_p9, %s3307_s19), 1  ;;  %2971 = vset.pattern.permute.xlu1 %v3260_v2  ;;  %2970 = vset.pattern.permute.xlu0 %v3261_v3  ;;  %vm3399_vm2 = vmpackc.low %vm294_vm1, %vm294_vm1 }
  0x34   : > { %s2380_s18 = sshll.u32 %s4175_s19, 7  ;;  %2566 = vmatprep.subr.mxu1 %v286_v5  ;;  %v3474_v58 = vshrl.u32 %v641_v57, 7 }
  0x35   : > { %s3395_s6 = scalar_lea.vmem %s4158_s0, %s2380_s18  ;;  %2567 = vmatpush3.msra.mxu1 %v286_v5  ;;  %s4127_s30 = scalar_lea.vmem %s4162_s4, %s2380_s18 }
  0x36   : > { %v238_v6 = vld [vmem:[%s3395_s6] sm:$0xff]  ;;  %v239_v7 = vld [vmem:[%s3395_s6 + $0x8] sm:$0xff]  ;;  %v240_v9 = vld [vmem:[%s3395_s6 + $0x10] sm:$0xff]  ;;  %v3477_v59 = vsub.s32 0, %v3474_v58 }
  0x37   : > { %v2792_v8 = vpack.c.bf16 %v239_v7, %v238_v6  ;;  %2568 = vmatprep.mubr.msk.f32.mxu1 %vm294_vm1, %v238_v6  ;;  %v241_v10 = vld [vmem:[%s3395_s6 + $0x18] sm:$0xff]  ;;  %v242_v11 = vld [vmem:[%s3395_s6 + $0x20] sm:$0xff]  ;;  %v243_v13 = vld [vmem:[%s3395_s6 + $0x28] sm:$0xff] }
  0x38   : > { %2569 = vmatmul.mubr.msk.f32.vlgmr.msra.gmra.mrb[0].mxu1 %vm294_vm1, %v239_v7  ;;  %v2796_v12 = vpack.c.bf16 %v241_v10, %v240_v9  ;;  %v244_v14 = vld [vmem:[%s3395_s6 + $0x30] sm:$0xff]  ;;  %v245_v15 = vld [vmem:[%s3395_s6 + $0x38] sm:$0xff]  ;;  %v246_v16 = vld [vmem:[%s3395_s6 + $0x40] sm:$0xff]  ;;  %v2800_v17 = vpack.c.bf16 %v243_v13, %v242_v11 }
  0x39   : > { %2794 = vmatpush3.bf16.xpose.msk.msra.mxu0 %vm3399_vm2, %v2792_v8  ;;  %2571 = vmatprep.mubr.msk.f32.mxu1 %vm294_vm1, %v240_v9  ;;  %v247_v18 = vld [vmem:[%s3395_s6 + $0x48] sm:$0xff]  ;;  %v248_v19 = vld [vmem:[%s3395_s6 + $0x50] sm:$0xff]  ;;  %v249_v20 = vld [vmem:[%s3395_s6 + $0x58] sm:$0xff]  ;;  %v2804_v22 = vpack.c.bf16 %v245_v15, %v244_v14 }
  0x3a   : > { %2795 = vmatprep.subr.bf16.mxu0 %v3257_v0  ;;  %v250_v21 = vld [vmem:[%s3395_s6 + $0x60] sm:$0xff]  ;;  %v251_v23 = vld [vmem:[%s3395_s6 + $0x68] sm:$0xff]  ;;  %v252_v24 = vld [vmem:[%s3395_s6 + $0x70] sm:$0xff]  ;;  %v2808_v26 = vpack.c.bf16 %v247_v18, %v246_v16  ;;  %v2812_v27 = vpack.c.bf16 %v249_v20, %v248_v19 }
  0x3b   : > { %v253_v25 = vld [vmem:[%s3395_s6 + $0x78] sm:$0xff]  ;;  %v2816_v28 = vpack.c.bf16 %v251_v23, %v250_v21 }
  0x3c   : > { %2572 = vmatmul.mubr.msk.f32.gmra.mrb[2].mxu1 %vm294_vm1, %v241_v10  ;;  %v2820_v29 = vpack.c.bf16 %v253_v25, %v252_v24 }
  0x3d   : > { %2574 = vmatprep.mubr.msk.f32.mxu1 %vm294_vm1, %v242_v11  ;;  %v254_v11 = vld [vmem:[%s3374_s9] sm:$0xff] }
  0x40   : > { %2575 = vmatmul.mubr.msk.f32.gmra.mrb[4].mxu1 %vm294_vm1, %v243_v13 }
  0x41   : > { %2798 = vmatpush3.bf16.xpose.msk.msra.mxu0 %vm3399_vm2, %v2796_v12  ;;  %2577 = vmatprep.mubr.msk.f32.mxu1 %vm294_vm1, %v244_v14 }
  0x42   : > { %2799 = vmatprep.subr.bf16.mxu0 %v3257_v0 }
  0x44   : > { %2578 = vmatmul.mubr.msk.f32.gmra.mrb[6].mxu1 %vm294_vm1, %v245_v15 }
  0x45   : > { %2580 = vmatprep.mubr.msk.f32.mxu1 %vm294_vm1, %v246_v16  ;;  %v257_v16 = vld [vmem:[%s3374_s9 + $0x18] sm:$0xff] }
  0x48   : > { %2581 = vmatmul.mubr.msk.f32.gmra.mrb[8].mxu1 %vm294_vm1, %v247_v18 }
  0x49   : > { %2802 = vmatpush3.bf16.xpose.msk.msra.mxu0 %vm3399_vm2, %v2800_v17  ;;  %2583 = vmatprep.mubr.msk.f32.mxu1 %vm294_vm1, %v248_v19 }
  0x4a   : > { %2803 = vmatprep.subr.bf16.mxu0 %v3257_v0 }
  0x4c   : > { %2584 = vmatmul.mubr.msk.f32.gmra.mrb[10].mxu1 %vm294_vm1, %v249_v20 }
  0x4d   : > { %2586 = vmatprep.mubr.msk.f32.mxu1 %vm294_vm1, %v250_v21 }
  0x50   : > { %2587 = vmatmul.mubr.msk.f32.gmra.mrb[12].mxu1 %vm294_vm1, %v251_v23 }
  0x51   : > { %2806 = vmatpush3.bf16.xpose.msk.msra.mxu0 %vm3399_vm2, %v2804_v22  ;;  %2589 = vmatprep.mubr.msk.f32.mxu1 %vm294_vm1, %v252_v24  ;;  %v256_v22 = vld [vmem:[%s3374_s9 + $0x10] sm:$0xff] }
  0x52   : > { %2807 = vmatprep.subr.bf16.mxu0 %v3257_v0 }
  0x54   : > { %2590 = vmatmul.mubr.msk.f32.gmra.mrb[14].mxu1 %vm294_vm1, %v253_v25 }
  0x59   : > { %2810 = vmatpush3.bf16.xpose.msk.msra.mxu0 %vm3399_vm2, %v2808_v26 }
  0x5a   : > { %2811 = vmatprep.subr.bf16.mxu0 %v3257_v0 }
  0x61   : > { %2814 = vmatpush3.bf16.xpose.msk.msra.mxu0 %vm3399_vm2, %v2812_v27 }
  0x62   : > { %2815 = vmatprep.subr.bf16.mxu0 %v3257_v0 }
  0x69   : > { %2818 = vmatpush3.bf16.xpose.msk.msra.mxu0 %vm3399_vm2, %v2816_v28 }
  0x6a   : > { %2819 = vmatprep.subr.bf16.mxu0 %v3257_v0 }
  0x71   : > { %2822 = vmatpush3.bf16.xpose.msk.msra.mxu0 %vm3399_vm2, %v2820_v29 }
  0x78   : > { %2564 = vmatmul.mubr.msk.f32.vlgmr.msra.gmra.mrb[0].mxu0 %vm294_vm1, %v287_v30  ;;  %v259_v30 = vld [vmem:[%s3374_s9 + $0x28] sm:$0xff] }
 0x10b   : > { %v2570_v31 = vpop.f32.mrb[0].mxu1 }
 0x10c   : > { %666 = vperm.xlu1 %2971, %v2570_v31   ;;  %568 = vperm.xlu0 %2970, %v2570_v31   ;;  %v482_v32 = vpop.f32.mrb[1].mxu1 }
 0x10d   : > { %v2823_v33 = vpack.c.bf16 %v2570_v31, %v482_v32 }
 0x10f   : > { %2824 = vmatprep.subr.bf16.mxu1 %v2823_v33  ;;  %v2573_v34 = vpop.f32.mrb[2].mxu1 }
 0x110   : > { %2973 = vset.pattern.permute.xlu1 %v3261_v3  ;;  %563 = vperm.xlu0 %2970, %v482_v32   ;;  %v492_v35 = vpop.f32.mrb[3].mxu1 }
 0x111   : > { %2826 = vmatpush3.bf16.msra.mxu1 %v2823_v33  ;;  %578 = vperm.xlu1 %2973, %v2573_v34   ;;  %v2827_v36 = vpack.c.bf16 %v2573_v34, %v492_v35  ;;  %v258_v33 = vld [vmem:[%s3374_s9 + $0x20] sm:$0xff] }
 0x113   : > { %v2576_v37 = vpop.f32.mrb[4].mxu1  ;;  %2828 = vmatprep.subr.bf16.mxu1 %v2827_v36 }
 0x114   : > { %2972 = vset.pattern.permute.xlu0 %v3260_v2  ;;  %v502_v38 = vpop.f32.mrb[5].mxu1 }
 0x115   : > { %662 = vperm.xlu0 %2972, %v482_v32   ;;  %573 = vperm.xlu1 %2973, %v492_v35   ;;  %v2831_v39 = vpack.c.bf16 %v2576_v37, %v502_v38 }
 0x116   : > { %2830 = vmatpush3.bf16.msra.mxu1 %v2827_v36 }
 0x117   : > { %v2579_v40 = vpop.f32.mrb[6].mxu1  ;;  %2832 = vmatprep.subr.bf16.mxu1 %v2831_v39 }
 0x118   : > { %v512_v41 = vpop.f32.mrb[7].mxu1 }
 0x119   : > { %2974 = vset.pattern.permute.xlu0 %v3261_v3  ;;  %588 = vperm.xlu1 %2973, %v2576_v37   ;;  %v2835_v42 = vpack.c.bf16 %v2579_v40, %v512_v41 }
 0x11a   : > { %583 = vperm.xlu0 %2974, %v502_v38   ;;  %2834 = vmatpush3.bf16.msra.mxu1 %v2831_v39 }
 0x11b   : > { %v2582_v43 = vpop.f32.mrb[8].mxu1  ;;  %2836 = vmatprep.subr.bf16.mxu1 %v2835_v42 }
 0x11c   : > { %v522_v44 = vpop.f32.mrb[9].mxu1 }
 0x11d   : > { %598 = vperm.xlu1 %2973, %v2579_v40   ;;  %v2839_v45 = vpack.c.bf16 %v2582_v43, %v522_v44 }
 0x11e   : > { %593 = vperm.xlu0 %2974, %v512_v41   ;;  %2838 = vmatpush3.bf16.msra.mxu1 %v2835_v42  ;;  %v261_v42 = vld [vmem:[%s3374_s9 + $0x38] sm:$0xff] }
 0x11f   : > { %v2585_v46 = vpop.f32.mrb[10].mxu1  ;;  %2840 = vmatprep.subr.bf16.mxu1 %v2839_v45 }
 0x120   : > { %v532_v47 = vpop.f32.mrb[11].mxu1 }
 0x121   : > { %608 = vperm.xlu1 %2973, %v2582_v43   ;;  %v2843_v48 = vpack.c.bf16 %v2585_v46, %v532_v47 }
 0x122   : > { %603 = vperm.xlu0 %2974, %v522_v44   ;;  %2842 = vmatpush3.bf16.msra.mxu1 %v2839_v45  ;;  %v260_v45 = vld [vmem:[%s3374_s9 + $0x30] sm:$0xff] }
 0x123   : > { %v2588_v49 = vpop.f32.mrb[12].mxu1  ;;  %2844 = vmatprep.subr.bf16.mxu1 %v2843_v48 }
 0x124   : > { %v542_v50 = vpop.f32.mrb[13].mxu1 }
 0x125   : > { %618 = vperm.xlu1 %2973, %v2585_v46   ;;  %v2847_v51 = vpack.c.bf16 %v2588_v49, %v542_v50 }
 0x126   : > { %613 = vperm.xlu0 %2974, %v532_v47   ;;  %2846 = vmatpush3.bf16.msra.mxu1 %v2843_v48 }
 0x127   : > { %2848 = vmatprep.subr.bf16.mxu1 %v2847_v51  ;;  %v2591_v52 = vpop.f32.mrb[14].mxu1 }
 0x128   : > { %v552_v53 = vpop.f32.mrb[15].mxu1 }
 0x129   : > { %628 = vperm.xlu1 %2973, %v2588_v49   ;;  %v2851_v54 = vpack.c.bf16 %v2591_v52, %v552_v53 }
 0x12a   : > { %623 = vperm.xlu0 %2974, %v542_v50   ;;  %2850 = vmatpush3.bf16.msra.mxu1 %v2847_v51 }
 0x12b   : > { %2852 = vmatprep.subr.bf16.mxu1 %v2851_v54 }
 0x12d   : > { %638 = vperm.xlu1 %2973, %v2591_v52  }
 0x12e   : > { %2976 = vset.pattern.permute.xlu0 %v3260_v2  ;;  %2854 = vmatpush3.bf16.msra.mxu1 %v2851_v54 }
 0x12f   : > { %674 = vperm.xlu0 %2976, %v2573_v34   ;;  %2855 = vmatprep.subr.bf16.mxu1 %v3257_v0 }
 0x131   : > { %2975 = vset.pattern.permute.xlu1 %v3260_v2 }
 0x132   : > { %670 = vperm.xlu1 %2975, %v492_v35  }
 0x133   : > { %682 = vperm.xlu0 %2976, %v2576_v37  }
 0x136   : > { %678 = vperm.xlu1 %2975, %v502_v38  }
 0x137   : > { %690 = vperm.xlu0 %2976, %v2579_v40  }
 0x13a   : > { %686 = vperm.xlu1 %2975, %v512_v41  }
 0x13b   : > { %698 = vperm.xlu0 %2976, %v2582_v43  }
 0x13e   : > { %694 = vperm.xlu1 %2975, %v522_v44  }
 0x13f   : > { %706 = vperm.xlu0 %2976, %v2585_v46  }
 0x142   : > { %702 = vperm.xlu1 %2975, %v532_v47  }
 0x143   : > { %714 = vperm.xlu0 %2976, %v2588_v49   ;;  %v727_v49 = vsub.s32 1, %v3474_v58 }
 0x146   : > { %710 = vperm.xlu1 %2975, %v542_v50  }
 0x147   : > { %722 = vperm.xlu0 %2976, %v2591_v52  }
 0x14a   : > { %718 = vperm.xlu1 %2975, %v552_v53  }
 0x14b   : > { %v3471_v55 = vpop.f32.mrb[0].mxu0  ;;  %2977 = vset.pattern.permute.xlu0 %v3261_v3  ;;  %v255_v3 = vld [vmem:[%s3374_s9 + $0x8] sm:$0xff] }
 0x14c   : > { %v2565_v56 = vpop.f32.mrb[1].mxu0  ;;  %633 = vperm.xlu0 %2977, %v552_v53   ;;  %v3481_v60 = vrot.slane %v3471_v55, %v3477_v59 }
 0x14d   : > { %v263_v56 = vld [vmem:[%s3374_s9 + $0x48] sm:$0xff] }
 0x18b   : > { %v3483_v61 = vpop.permute.xlu1 %666  ;;  %v569_v62 = vpop.permute.xlu0 %568 }
 0x18c   : > { %v646_v63 = vadd.f32 %v3481_v60, %v569_v62 }
 0x18e   : > { %v778_v2 = vmul.f32 0.2, %v646_v63  ;;  %vm746_vm3 = vcmp.gt.f32.partialorder %v646_v63, 0.0 }
 0x18f   : > { %v564_v4 = vpop.permute.xlu0 %563 }
 0x190   : > { %v645_v5 = vadd.f32 %v3481_v60, %v564_v4  ;;  %v579_v6 = vpop.permute.xlu1 %578  ;;  %v810_v7 = vsel %vm746_vm3, %v646_v63, %v778_v2  ;;  %v262_v63 = vld [vmem:[%s3374_s9 + $0x40] sm:$0xff] }
 0x191   : > { %v648_v8 = vadd.f32 %v3481_v60, %v579_v6  ;;  %v3489_v9 = vadd.f32 %v810_v7, %v255_v3 }
 0x192   : > { %v777_v10 = vmul.f32 0.2, %v645_v5  ;;  %vm745_vm4 = vcmp.gt.f32.partialorder %v645_v5, 0.0 }
 0x193   : > { %v780_v12 = vmul.f32 0.2, %v648_v8  ;;  %875 = vmax.xlane.f32.xlu0 %v3489_v9  ;;  %vm748_vm5 = vcmp.gt.f32.partialorder %v648_v8, 0.0 }
 0x194   : > { %v3493_v13 = vpop.permute.xlu0 %662  ;;  %v574_v14 = vpop.permute.xlu1 %573  ;;  %v809_v15 = vsel %vm745_vm4, %v645_v5, %v777_v10  ;;  %v3536_v5 = vrot.slane %v3471_v55, %v727_v49 }
 0x195   : > { %v647_v17 = vadd.f32 %v3481_v60, %v574_v14  ;;  %v3497_v18 = vadd.f32 %v809_v15, %v254_v11  ;;  %v812_v19 = vsel %vm748_vm5, %v648_v8, %v780_v12  ;;  %v265_v12 = vld [vmem:[%s3374_s9 + $0x58] sm:$0xff] }
 0x196   : > { %v3500_v21 = vadd.f32 %v812_v19, %v257_v16  ;;  %v264_v16 = vld [vmem:[%s3374_s9 + $0x50] sm:$0xff] }
 0x197   : > { %v779_v20 = vmul.f32 0.2, %v647_v17  ;;  %873 = vmax.xlane.f32.xlu1 %v3497_v18  ;;  %vm747_vm6 = vcmp.gt.f32.partialorder %v647_v17, 0.0 }
 0x198   : > { %v589_v23 = vpop.permute.xlu1 %588 }
 0x199   : > { %v650_v24 = vadd.f32 %v3481_v60, %v589_v23  ;;  %v584_v25 = vpop.permute.xlu0 %583  ;;  %v811_v26 = vsel %vm747_vm6, %v647_v17, %v779_v20  ;;  %v730_v20 = vadd.f32 %v3536_v5, %v3483_v61 }
 0x19a   : > { %v649_v27 = vadd.f32 %v3481_v60, %v584_v25  ;;  %v3505_v28 = vadd.f32 %v811_v26, %v256_v22 }
 0x19b   : > { %v782_v29 = vmul.f32 0.2, %v650_v24  ;;  %879 = vmax.xlane.f32.xlu1 %v3500_v21  ;;  %vm750_vm7 = vcmp.gt.f32.partialorder %v650_v24, 0.0  ;;  %vm762_vm3 = vcmp.gt.f32.partialorder %v730_v20, 0.0 }
 0x19c   : > { %v781_v31 = vmul.f32 0.2, %v649_v27  ;;  %v599_v32 = vpop.permute.xlu1 %598  ;;  %877 = vmax.xlane.f32.xlu0 %v3505_v28  ;;  %vm749_vm8 = vcmp.gt.f32.partialorder %v649_v27, 0.0 }
 0x19d   : > { %v652_v34 = vadd.f32 %v3481_v60, %v599_v32  ;;  %v594_v35 = vpop.permute.xlu0 %593  ;;  %v814_v36 = vsel %vm750_vm7, %v650_v24, %v782_v29 }
 0x19e   : > { %v651_v37 = vadd.f32 %v3481_v60, %v594_v35  ;;  %v3513_v38 = vadd.f32 %v814_v36, %v259_v30  ;;  %v813_v39 = vsel %vm749_vm8, %v649_v27, %v781_v31  ;;  %v267_v27 = vld [vmem:[%s3374_s9 + $0x68] sm:$0xff]  ;;  %v266_v31 = vld [vmem:[%s3374_s9 + $0x60] sm:$0xff] }
 0x19f   : > { %v784_v40 = vmul.f32 0.2, %v652_v34  ;;  %v3515_v41 = vadd.f32 %v813_v39, %v258_v33  ;;  %vm752_vm9 = vcmp.gt.f32.partialorder %v652_v34, 0.0  ;;  %v794_v33 = vmul.f32 0.2, %v730_v20 }
 0x1a0   : > { %v783_v43 = vmul.f32 0.2, %v651_v37  ;;  %v609_v44 = vpop.permute.xlu1 %608  ;;  %883 = vmax.xlane.f32.xlu1 %v3513_v38  ;;  %vm751_vm10 = vcmp.gt.f32.partialorder %v651_v37, 0.0 }
 0x1a1   : > { %v654_v46 = vadd.f32 %v3481_v60, %v609_v44  ;;  %v604_v47 = vpop.permute.xlu0 %603  ;;  %881 = vmax.xlane.f32.xlu0 %v3515_v41  ;;  %v816_v48 = vsel %vm752_vm9, %v652_v34, %v784_v40 }
 0x1a2   : > { %v653_v50 = vadd.f32 %v3481_v60, %v604_v47  ;;  %v3524_v51 = vadd.f32 %v816_v48, %v261_v42  ;;  %v815_v52 = vsel %vm751_vm10, %v651_v37, %v783_v43  ;;  %v269_v42 = vld [vmem:[%s3374_s9 + $0x78] sm:$0xff]  ;;  %v271_v48 = vld [vmem:[%s3374_s9 + $0x88] sm:$0xff] }
 0x1a3   : > { %v786_v53 = vmul.f32 0.2, %v654_v46  ;;  %v3526_v54 = vadd.f32 %v815_v52, %v260_v45  ;;  %vm754_vm11 = vcmp.gt.f32.partialorder %v654_v46, 0.0 }
 0x1a4   : > { %v785_v57 = vmul.f32 0.2, %v653_v50  ;;  %v619_v62 = vpop.permute.xlu1 %618  ;;  %887 = vmax.xlane.f32.xlu1 %v3524_v51  ;;  %vm753_vm12 = vcmp.gt.f32.partialorder %v653_v50, 0.0 }
 0x1a5   : > { %v656_v2 = vadd.f32 %v3481_v60, %v619_v62  ;;  %v614_v3 = vpop.permute.xlu0 %613  ;;  %885 = vmax.xlane.f32.xlu0 %v3526_v54  ;;  %v818_v4 = vsel %vm754_vm11, %v654_v46, %v786_v53  ;;  %v273_v62 = vld [vmem:[%s3374_s9 + $0x98] sm:$0xff] }
 0x1a6   : > { %v655_v6 = vadd.f32 %v3481_v60, %v614_v3  ;;  %v3539_v7 = vadd.f32 %v818_v4, %v263_v56  ;;  %v817_v8 = vsel %vm753_vm12, %v653_v50, %v785_v57  ;;  %v826_v50 = vsel %vm762_vm3, %v730_v20, %v794_v33 }
 0x1a7   : > { %v788_v10 = vmul.f32 0.2, %v656_v2  ;;  %v3541_v11 = vadd.f32 %v817_v8, %v262_v63  ;;  %vm756_vm13 = vcmp.gt.f32.partialorder %v656_v2, 0.0  ;;  %v3573_v53 = vadd.f32 %v826_v50, %v271_v48  ;;  %v275_v8 = vld [vmem:[%s3374_s9 + $0xa8] sm:$0xff] }
 0x1a8   : > { %v787_v14 = vmul.f32 0.2, %v655_v6  ;;  %v629_v15 = vpop.permute.xlu1 %628  ;;  %891 = vmax.xlane.f32.xlu1 %v3539_v7  ;;  %vm755_vm14 = vcmp.gt.f32.partialorder %v655_v6, 0.0 }
 0x1a9   : > { %v658_v55 = vadd.f32 %v3481_v60, %v629_v15  ;;  %v624_v17 = vpop.permute.xlu0 %623  ;;  %889 = vmax.xlane.f32.xlu0 %v3541_v11  ;;  %v820_v19 = vsel %vm756_vm13, %v656_v2, %v788_v10 }
 0x1aa   : > { %v657_v22 = vadd.f32 %v3481_v60, %v624_v17  ;;  %v3551_v23 = vadd.f32 %v820_v19, %v265_v12  ;;  %v819_v24 = vsel %vm755_vm14, %v655_v6, %v787_v14  ;;  %v277_v17 = vld [vmem:[%s3374_s9 + $0xb8] sm:$0xff] }
 0x1ab   : > { %v790_v25 = vmul.f32 0.2, %v658_v55  ;;  %v3553_v26 = vadd.f32 %v819_v24, %v264_v16  ;;  %vm758_vm15 = vcmp.gt.f32.partialorder %v658_v55, 0.0 }
 0x1ac   : > { %v789_v29 = vmul.f32 0.2, %v657_v22  ;;  %v639_v30 = vpop.permute.xlu1 %638  ;;  %895 = vmax.xlane.f32.xlu1 %v3551_v23  ;;  %vm757_vm1 = vcmp.gt.f32.partialorder %v657_v22, 0.0 }
 0x1ad   : > { %v660_v32 = vadd.f32 %v3481_v60, %v639_v30  ;;  %893 = vmax.xlane.f32.xlu0 %v3553_v26  ;;  %v822_v61 = vsel %vm758_vm15, %v658_v55, %v790_v25 }
 0x1ae   : > { %v675_v34 = vpop.permute.xlu0 %674  ;;  %v3560_v35 = vadd.f32 %v822_v61, %v267_v27  ;;  %v821_v36 = vsel %vm757_vm1, %v657_v22, %v789_v29  ;;  %v279_v27 = vld [vmem:[%s3374_s9 + $0xc8] sm:$0xff] }
 0x1af   : > { %v792_v37 = vmul.f32 0.2, %v660_v32  ;;  %v732_v39 = vadd.f32 %v3536_v5, %v675_v34  ;;  %v3563_v40 = vadd.f32 %v821_v36, %v266_v31  ;;  %vm760_vm2 = vcmp.gt.f32.partialorder %v660_v32, 0.0  ;;  %v281_v34 = vld [vmem:[%s3374_s9 + $0xd8] sm:$0xff] }
 0x1b0   : > { %899 = vmax.xlane.f32.xlu1 %v3560_v35 }
 0x1b1   : > { %897 = vmax.xlane.f32.xlu0 %v3563_v40  ;;  %v824_v43 = vsel %vm760_vm2, %v660_v32, %v792_v37  ;;  %v796_v46 = vmul.f32 0.2, %v732_v39  ;;  %vm764_vm4 = vcmp.gt.f32.partialorder %v732_v39, 0.0  ;;  %v671_v15 = vpop.permute.xlu1 %670  ;;  %v729_v37 = vadd.f32 %v3536_v5, %v3493_v13  ;;  %v268_v13 = vld [vmem:[%s3374_s9 + $0x70] sm:$0xff] }
 0x1b2   : > { %v683_v44 = vpop.permute.xlu0 %682  ;;  %v3568_v45 = vadd.f32 %v824_v43, %v269_v42 }
 0x1b3   : > { %v734_v47 = vadd.f32 %v3536_v5, %v683_v44  ;;  %v828_v63 = vsel %vm764_vm4, %v732_v39, %v796_v46  ;;  %v283_v46 = vld [vmem:[%s3374_s9 + $0xe8] sm:$0xff]  ;;  %v793_v50 = vmul.f32 0.2, %v729_v37  ;;  %vm761_vm12 = vcmp.gt.f32.partialorder %v729_v37, 0.0 }
 0x1b4   : > { %903 = vmax.xlane.f32.xlu1 %v3568_v45  ;;  %v3578_v3 = vadd.f32 %v828_v63, %v273_v62  ;;  %v285_v62 = vld [vmem:[%s3374_s9 + $0xf8] sm:$0xff] }
 0x1b5   : > { %v798_v56 = vmul.f32 0.2, %v734_v47  ;;  %vm766_vm5 = vcmp.gt.f32.partialorder %v734_v47, 0.0  ;;  %v679_v30 = vpop.permute.xlu1 %678 }
 0x1b6   : > { %v691_v52 = vpop.permute.xlu0 %690 }
 0x1b7   : > { %v736_v57 = vadd.f32 %v3536_v5, %v691_v52  ;;  %v830_v10 = vsel %vm766_vm5, %v734_v47, %v798_v56  ;;  %v731_v52 = vadd.f32 %v3536_v5, %v671_v15  ;;  %v825_v15 = vsel %vm761_vm12, %v729_v37, %v793_v50  ;;  %v276_v37 = vld [vmem:[%s3374_s9 + $0xb0] sm:$0xff] }
 0x1b8   : > { %907 = vmax.xlane.f32.xlu1 %v3573_v53  ;;  %v3583_v14 = vadd.f32 %v830_v10, %v275_v8  ;;  %v733_v8 = vadd.f32 %v3536_v5, %v679_v30  ;;  %v274_v30 = vld [vmem:[%s3374_s9 + $0xa0] sm:$0xff] }
 0x1b9   : > { %v800_v4 = vmul.f32 0.2, %v736_v57  ;;  %vm768_vm6 = vcmp.gt.f32.partialorder %v736_v57, 0.0  ;;  %v687_v42 = vpop.permute.xlu1 %686  ;;  %vm763_vm13 = vcmp.gt.f32.partialorder %v731_v52, 0.0 }
 0x1ba   : > { %v699_v2 = vpop.permute.xlu0 %698  ;;  %vm765_vm14 = vcmp.gt.f32.partialorder %v733_v8, 0.0 }
 0x1bb   : > { %v738_v6 = vadd.f32 %v3536_v5, %v699_v2  ;;  %v832_v19 = vsel %vm768_vm6, %v736_v57, %v800_v4 }
 0x1bc   : > { %911 = vmax.xlane.f32.xlu1 %v3578_v3  ;;  %v3588_v22 = vadd.f32 %v832_v19, %v277_v17  ;;  %v735_v17 = vadd.f32 %v3536_v5, %v687_v42  ;;  %v272_v19 = vld [vmem:[%s3374_s9 + $0x90] sm:$0xff] }
 0x1bd   : > { %v802_v16 = vmul.f32 0.2, %v738_v6  ;;  %vm770_vm7 = vcmp.gt.f32.partialorder %v738_v6, 0.0 }
 0x1be   : > { %v707_v12 = vpop.permute.xlu0 %706  ;;  %vm767_vm15 = vcmp.gt.f32.partialorder %v735_v17, 0.0 }
 0x1bf   : > { %v740_v55 = vadd.f32 %v3536_v5, %v707_v12  ;;  %v834_v29 = vsel %vm770_vm7, %v738_v6, %v802_v16  ;;  %v795_v6 = vmul.f32 0.2, %v731_v52  ;;  %v270_v12 = vld [vmem:[%s3374_s9 + $0x80] sm:$0xff] }
 0x1c0   : > { %915 = vmax.xlane.f32.xlu1 %v3583_v14  ;;  %v3593_v32 = vadd.f32 %v834_v29, %v279_v27  ;;  %v3619_v16 = vadd.f32 %v825_v15, %v270_v12  ;;  %v799_v27 = vmul.f32 0.2, %v735_v17  ;;  %v284_v15 = vld [vmem:[%s3374_s9 + $0xf0] sm:$0xff] }
 0x1c1   : > { %v804_v24 = vmul.f32 0.2, %v740_v55  ;;  %vm772_vm8 = vcmp.gt.f32.partialorder %v740_v55, 0.0 }
 0x1c2   : > { %v715_v20 = vpop.permute.xlu0 %714  ;;  %v831_v42 = vsel %vm767_vm15, %v735_v17, %v799_v27 }
 0x1c3   : > { %v742_v25 = vadd.f32 %v3536_v5, %v715_v20  ;;  %v836_v36 = vsel %vm772_vm8, %v740_v55, %v804_v24  ;;  %v797_v55 = vmul.f32 0.2, %v733_v8  ;;  %v827_v20 = vsel %vm763_vm13, %v731_v52, %v795_v6  ;;  %v282_v6 = vld [vmem:[%s3374_s9 + $0xe0] sm:$0xff] }
 0x1c4   : > { %919 = vmax.xlane.f32.xlu1 %v3588_v22  ;;  %v3600_v39 = vadd.f32 %v836_v36, %v281_v34 }
 0x1c5   : > { %v806_v61 = vmul.f32 0.2, %v742_v25  ;;  %vm774_vm9 = vcmp.gt.f32.partialorder %v742_v25, 0.0 }
 0x1c6   : > { %v723_v31 = vpop.permute.xlu0 %722 }
 0x1c7   : > { %v744_v33 = vadd.f32 %v3536_v5, %v723_v31  ;;  %v838_v47 = vsel %vm774_vm9, %v742_v25, %v806_v61  ;;  %v3624_v25 = vadd.f32 %v827_v20, %v272_v19  ;;  %v829_v31 = vsel %vm765_vm14, %v733_v8, %v797_v55 }
 0x1c8   : > { %923 = vmax.xlane.f32.xlu1 %v3593_v32  ;;  %v3606_v57 = vadd.f32 %v838_v47, %v283_v46  ;;  %v278_v47 = vld [vmem:[%s3374_s9 + $0xc0] sm:$0xff] }
 0x1c9   : > { %v808_v43 = vmul.f32 0.2, %v744_v33  ;;  %vm776_vm10 = vcmp.gt.f32.partialorder %v744_v33, 0.0 }
 0x1cb   : > { %v634_v44 = vpop.permute.xlu0 %633  ;;  %v840_v63 = vsel %vm776_vm10, %v744_v33, %v808_v43  ;;  %v3629_v33 = vadd.f32 %v829_v31, %v274_v30  ;;  %v3634_v43 = vadd.f32 %v831_v42, %v276_v37 }
 0x1cc   : > { %v659_v48 = vadd.f32 %v3481_v60, %v634_v44  ;;  %927 = vmax.xlane.f32.xlu1 %v3600_v39  ;;  %v695_v60 = vpop.permute.xlu1 %694  ;;  %v3614_v10 = vadd.f32 %v840_v63, %v285_v62  ;;  %v280_v62 = vld [vmem:[%s3374_s9 + $0xd0] sm:$0xff] }
 0x1cd   : > { %v737_v29 = vadd.f32 %v3536_v5, %v695_v60 }
 0x1ce   : > { %v791_v56 = vmul.f32 0.2, %v659_v48  ;;  %vm759_vm11 = vcmp.gt.f32.partialorder %v659_v48, 0.0 }
 0x1cf   : > { %v801_v34 = vmul.f32 0.2, %v737_v29  ;;  %vm769_vm1 = vcmp.gt.f32.partialorder %v737_v29, 0.0 }
 0x1d0   : > { %931 = vmax.xlane.f32.xlu1 %v3606_v57  ;;  %v823_v2 = vsel %vm759_vm11, %v659_v48, %v791_v56  ;;  %v703_v24 = vpop.permute.xlu1 %702 }
 0x1d1   : > { %v3611_v4 = vadd.f32 %v823_v2, %v268_v13  ;;  %v739_v36 = vadd.f32 %v3536_v5, %v703_v24  ;;  %v833_v48 = vsel %vm769_vm1, %v737_v29, %v801_v34 }
 0x1d2   : > { %v3639_v52 = vadd.f32 %v833_v48, %v278_v47 }
 0x1d3   : > { %901 = vmax.xlane.f32.xlu0 %v3611_v4  ;;  %v803_v44 = vmul.f32 0.2, %v739_v36  ;;  %vm771_vm2 = vcmp.gt.f32.partialorder %v739_v36, 0.0 }
 0x1d4   : > { %935 = vmax.xlane.f32.xlu1 %v3614_v10  ;;  %v711_v61 = vpop.permute.xlu1 %710 }
 0x1d5   : > { %v741_v46 = vadd.f32 %v3536_v5, %v711_v61  ;;  %v835_v63 = vsel %vm771_vm2, %v739_v36, %v803_v44 }
 0x1d6   : > { %v3644_v2 = vadd.f32 %v835_v63, %v280_v62 }
 0x1d7   : > { %905 = vmax.xlane.f32.xlu0 %v3619_v16  ;;  %v805_v56 = vmul.f32 0.2, %v741_v46  ;;  %vm773_vm3 = vcmp.gt.f32.partialorder %v741_v46, 0.0 }
 0x1d8   : > { %v719_v50 = vpop.permute.xlu1 %718 }
 0x1d9   : > { %v743_v13 = vadd.f32 %v3536_v5, %v719_v50  ;;  %v837_v8 = vsel %vm773_vm3, %v741_v46, %v805_v56 }
 0x1da   : > { %v3648_v12 = vadd.f32 %v837_v8, %v282_v6 }
 0x1db   : > { %909 = vmax.xlane.f32.xlu0 %v3624_v25  ;;  %v807_v60 = vmul.f32 0.2, %v743_v13  ;;  %vm775_vm4 = vcmp.gt.f32.partialorder %v743_v13, 0.0 }
 0x1dd   : > { %v839_v55 = vsel %vm775_vm4, %v743_v13, %v807_v60 }
 0x1de   : > { %v3652_v5 = vadd.f32 %v839_v55, %v284_v15 }
 0x1df   : > { %913 = vmax.xlane.f32.xlu0 %v3629_v33 }
 0x1e3   : > { %917 = vmax.xlane.f32.xlu0 %v3634_v43 }
 0x1e7   : > { %921 = vmax.xlane.f32.xlu0 %v3639_v52 }
 0x1eb   : > { %925 = vmax.xlane.f32.xlu0 %v3644_v2 }
 0x1ef   : > { %929 = vmax.xlane.f32.xlu0 %v3648_v12 }
 0x1f3   : > { %933 = vmax.xlane.f32.xlu0 %v3652_v5 }
 0x220   : > { %v876_v17 = vpop.xlane.xlu0 %875 }
 0x221   : > { %v938_v19 = vsub.f32 %v3489_v9, %v876_v17 }
 0x223   : > { %v971_v20 = vmul.f32 1.442695, %v938_v19 }
 0x224   : > { %v874_v24 = vpop.xlane.xlu1 %873 }
 0x225   : > { %2980 = vpow2.f32 %v971_v20  ;;  %v937_v27 = vsub.f32 %v3497_v18, %v874_v24 }
 0x227   : > { %v969_v29 = vmul.f32 1.442695, %v937_v27 }
 0x228   : > { %v880_v30 = vpop.xlane.xlu1 %879 }
 0x229   : > { %2982 = vpow2.f32 %v969_v29  ;;  %v940_v31 = vsub.f32 %v3500_v21, %v880_v30  ;;  %v878_v61 = vpop.xlane.xlu0 %877 }
 0x22a   : > { %v939_v34 = vsub.f32 %v3505_v28, %v878_v61 }
 0x22b   : > { %v975_v36 = vmul.f32 1.442695, %v940_v31 }
 0x22c   : > { %v973_v37 = vmul.f32 1.442695, %v939_v34 }
 0x22d   : > { %2984 = vpow2.f32 %v975_v36  ;;  %v884_v42 = vpop.xlane.xlu1 %883 }
 0x22e   : > { %2986 = vpow2.f32 %v973_v37  ;;  %v942_v9 = vsub.f32 %v3513_v38, %v884_v42  ;;  %v882_v44 = vpop.xlane.xlu0 %881 }
 0x22f   : > { %v3660_v46 = vpop.eup %2980  ;;  %v941_v18 = vsub.f32 %v3515_v41, %v882_v44 }
 0x230   : > { %v979_v47 = vmul.f32 1.442695, %v942_v9  ;;  %1035 = vadd.xlane.f32.xlu1 %v3660_v46 }
 0x231   : > { %v977_v48 = vmul.f32 1.442695, %v941_v18  ;;  %v888_v21 = vpop.xlane.xlu1 %887 }
 0x232   : > { %2988 = vpow2.f32 %v979_v47  ;;  %v944_v28 = vsub.f32 %v3524_v51, %v888_v21  ;;  %v886_v50 = vpop.xlane.xlu0 %885 }
 0x233   : > { %v3665_v56 = vpop.eup %2982  ;;  %2990 = vpow2.f32 %v977_v48  ;;  %v943_v13 = vsub.f32 %v3526_v54, %v886_v50 }
 0x234   : > { %v983_v38 = vmul.f32 1.442695, %v944_v28  ;;  %1033 = vadd.xlane.f32.xlu0 %v3665_v56 }
 0x235   : > { %v981_v62 = vmul.f32 1.442695, %v943_v13  ;;  %v892_v63 = vpop.xlane.xlu1 %891 }
 0x236   : > { %2992 = vpow2.f32 %v983_v38  ;;  %v946_v41 = vsub.f32 %v3539_v7, %v892_v63  ;;  %v890_v60 = vpop.xlane.xlu0 %889 }
 0x237   : > { %v3670_v6 = vpop.eup %2984  ;;  %2994 = vpow2.f32 %v981_v62  ;;  %v945_v51 = vsub.f32 %v3541_v11, %v890_v60 }
 0x238   : > { %v3673_v8 = vpop.eup %2986  ;;  %v987_v15 = vmul.f32 1.442695, %v946_v41  ;;  %1039 = vadd.xlane.f32.xlu1 %v3670_v6 }
 0x239   : > { %v985_v54 = vmul.f32 1.442695, %v945_v51  ;;  %1037 = vadd.xlane.f32.xlu0 %v3673_v8  ;;  %v896_v55 = vpop.xlane.xlu1 %895 }
 0x23a   : > { %2996 = vpow2.f32 %v987_v15  ;;  %v948_v17 = vsub.f32 %v3551_v23, %v896_v55  ;;  %v894_v19 = vpop.xlane.xlu0 %893 }
 0x23b   : > { %2998 = vpow2.f32 %v985_v54  ;;  %v947_v7 = vsub.f32 %v3553_v26, %v894_v19 }
 0x23c   : > { %v3679_v20 = vpop.eup %2988  ;;  %v991_v24 = vmul.f32 1.442695, %v948_v17 }
 0x23d   : > { %v3681_v11 = vpop.eup %2990  ;;  %v989_v27 = vmul.f32 1.442695, %v947_v7  ;;  %1043 = vadd.xlane.f32.xlu1 %v3679_v20  ;;  %v900_v29 = vpop.xlane.xlu1 %899 }
 0x23e   : > { %3000 = vpow2.f32 %v991_v24  ;;  %v950_v30 = vsub.f32 %v3560_v35, %v900_v29  ;;  %v898_v31 = vpop.xlane.xlu0 %897  ;;  %1041 = vadd.xlane.f32.xlu0 %v3681_v11 }
 0x23f   : > { %3002 = vpow2.f32 %v989_v27  ;;  %v949_v23 = vsub.f32 %v3563_v40, %v898_v31 }
 0x240   : > { %v3687_v61 = vpop.eup %2992  ;;  %v995_v26 = vmul.f32 1.442695, %v950_v30 }
 0x241   : > { %v3689_v34 = vpop.eup %2994  ;;  %v993_v36 = vmul.f32 1.442695, %v949_v23  ;;  %1047 = vadd.xlane.f32.xlu1 %v3687_v61  ;;  %v904_v37 = vpop.xlane.xlu1 %903 }
 0x242   : > { %3004 = vpow2.f32 %v995_v26  ;;  %v952_v42 = vsub.f32 %v3568_v45, %v904_v37  ;;  %1045 = vadd.xlane.f32.xlu0 %v3689_v34 }
 0x243   : > { %3006 = vpow2.f32 %v993_v36 }
 0x244   : > { %v3694_v35 = vpop.eup %2996  ;;  %v999_v9 = vmul.f32 1.442695, %v952_v42 }
 0x245   : > { %v3696_v44 = vpop.eup %2998  ;;  %1051 = vadd.xlane.f32.xlu1 %v3694_v35  ;;  %v908_v40 = vpop.xlane.xlu1 %907 }
 0x246   : > { %3008 = vpow2.f32 %v999_v9  ;;  %v954_v18 = vsub.f32 %v3573_v53, %v908_v40  ;;  %1049 = vadd.xlane.f32.xlu0 %v3696_v44 }
 0x248   : > { %v3701_v47 = vpop.eup %3000  ;;  %v1003_v48 = vmul.f32 1.442695, %v954_v18 }
 0x249   : > { %v3703_v45 = vpop.eup %3002  ;;  %1055 = vadd.xlane.f32.xlu1 %v3701_v47  ;;  %v912_v21 = vpop.xlane.xlu1 %911 }
 0x24a   : > { %3010 = vpow2.f32 %v1003_v48  ;;  %v956_v28 = vsub.f32 %v3578_v3, %v912_v21  ;;  %1053 = vadd.xlane.f32.xlu0 %v3703_v45 }
 0x24c   : > { %v3708_v50 = vpop.eup %3004  ;;  %v1007_v13 = vmul.f32 1.442695, %v956_v28 }
 0x24d   : > { %v3710_v38 = vpop.eup %3006  ;;  %1059 = vadd.xlane.f32.xlu1 %v3708_v50  ;;  %v916_v53 = vpop.xlane.xlu1 %915 }
 0x24e   : > { %3012 = vpow2.f32 %v1007_v13  ;;  %v958_v62 = vsub.f32 %v3583_v14, %v916_v53  ;;  %1057 = vadd.xlane.f32.xlu0 %v3710_v38 }
 0x250   : > { %v3715_v63 = vpop.eup %3008  ;;  %v1011_v41 = vmul.f32 1.442695, %v958_v62 }
 0x251   : > { %1063 = vadd.xlane.f32.xlu1 %v3715_v63  ;;  %v920_v3 = vpop.xlane.xlu1 %919 }
 0x252   : > { %3014 = vpow2.f32 %v1011_v41  ;;  %v960_v60 = vsub.f32 %v3588_v22, %v920_v3 }
 0x254   : > { %v3719_v51 = vpop.eup %3010  ;;  %v1015_v15 = vmul.f32 1.442695, %v960_v60 }
 0x255   : > { %1067 = vadd.xlane.f32.xlu1 %v3719_v51  ;;  %v924_v54 = vpop.xlane.xlu1 %923 }
 0x256   : > { %3016 = vpow2.f32 %v1015_v15  ;;  %v962_v14 = vsub.f32 %v3593_v32, %v924_v54 }
 0x258   : > { %v3723_v55 = vpop.eup %3012  ;;  %v1019_v17 = vmul.f32 1.442695, %v962_v14 }
 0x259   : > { %1071 = vadd.xlane.f32.xlu1 %v3723_v55  ;;  %v928_v19 = vpop.xlane.xlu1 %927 }
 0x25a   : > { %3018 = vpow2.f32 %v1019_v17  ;;  %v964_v7 = vsub.f32 %v3600_v39, %v928_v19 }
 0x25c   : > { %v3727_v24 = vpop.eup %3014  ;;  %v1023_v22 = vmul.f32 1.442695, %v964_v7 }
 0x25d   : > { %1075 = vadd.xlane.f32.xlu1 %v3727_v24  ;;  %v932_v27 = vpop.xlane.xlu1 %931 }
 0x25e   : > { %3020 = vpow2.f32 %v1023_v22  ;;  %v966_v29 = vsub.f32 %v3606_v57, %v932_v27 }
 0x260   : > { %v3731_v30 = vpop.eup %3016  ;;  %v1027_v32 = vmul.f32 1.442695, %v966_v29  ;;  %v902_v31 = vpop.xlane.xlu0 %901 }
 0x261   : > { %v951_v23 = vsub.f32 %v3611_v4, %v902_v31  ;;  %1079 = vadd.xlane.f32.xlu1 %v3731_v30  ;;  %v936_v26 = vpop.xlane.xlu1 %935 }
 0x262   : > { %3022 = vpow2.f32 %v1027_v32  ;;  %v968_v39 = vsub.f32 %v3614_v10, %v936_v26 }
 0x263   : > { %v997_v36 = vmul.f32 1.442695, %v951_v23 }
 0x264   : > { %v3736_v37 = vpop.eup %3018  ;;  %v1031_v42 = vmul.f32 1.442695, %v968_v39  ;;  %v906_v9 = vpop.xlane.xlu0 %905 }
 0x265   : > { %3024 = vpow2.f32 %v997_v36  ;;  %v953_v57 = vsub.f32 %v3619_v16, %v906_v9  ;;  %1083 = vadd.xlane.f32.xlu1 %v3736_v37 }
 0x266   : > { %3026 = vpow2.f32 %v1031_v42 }
 0x267   : > { %v1001_v40 = vmul.f32 1.442695, %v953_v57 }
 0x268   : > { %v3740_v18 = vpop.eup %3020  ;;  %v910_v4 = vpop.xlane.xlu0 %909 }
 0x269   : > { %3028 = vpow2.f32 %v1001_v40  ;;  %v955_v48 = vsub.f32 %v3624_v25, %v910_v4  ;;  %1087 = vadd.xlane.f32.xlu1 %v3740_v18 }
 0x26b   : > { %v1005_v10 = vmul.f32 1.442695, %v955_v48 }
 0x26c   : > { %v3744_v21 = vpop.eup %3022  ;;  %v914_v28 = vpop.xlane.xlu0 %913 }
 0x26d   : > { %3030 = vpow2.f32 %v1005_v10  ;;  %v957_v13 = vsub.f32 %v3629_v33, %v914_v28  ;;  %1091 = vadd.xlane.f32.xlu1 %v3744_v21 }
 0x26f   : > { %v3748_v16 = vpop.eup %3024  ;;  %v1009_v53 = vmul.f32 1.442695, %v957_v13 }
 0x270   : > { %v3750_v62 = vpop.eup %3026  ;;  %v918_v41 = vpop.xlane.xlu0 %917  ;;  %1061 = vadd.xlane.f32.xlu0 %v3748_v16 }
 0x271   : > { %3032 = vpow2.f32 %v1009_v53  ;;  %v959_v25 = vsub.f32 %v3634_v43, %v918_v41  ;;  %1095 = vadd.xlane.f32.xlu1 %v3750_v62 }
 0x273   : > { %v3755_v3 = vpop.eup %3028  ;;  %v1013_v60 = vmul.f32 1.442695, %v959_v25 }
 0x274   : > { %v922_v15 = vpop.xlane.xlu0 %921  ;;  %1065 = vadd.xlane.f32.xlu0 %v3755_v3 }
 0x275   : > { %3034 = vpow2.f32 %v1013_v60  ;;  %v961_v33 = vsub.f32 %v3639_v52, %v922_v15 }
 0x277   : > { %v3759_v54 = vpop.eup %3030  ;;  %v1017_v14 = vmul.f32 1.442695, %v961_v33 }
 0x278   : > { %v926_v17 = vpop.xlane.xlu0 %925  ;;  %1069 = vadd.xlane.f32.xlu0 %v3759_v54 }
 0x279   : > { %3036 = vpow2.f32 %v1017_v14  ;;  %v963_v43 = vsub.f32 %v3644_v2, %v926_v17 }
 0x27b   : > { %v3763_v19 = vpop.eup %3032  ;;  %v1021_v7 = vmul.f32 1.442695, %v963_v43 }
 0x27c   : > { %v930_v22 = vpop.xlane.xlu0 %929  ;;  %1073 = vadd.xlane.f32.xlu0 %v3763_v19 }
 0x27d   : > { %3038 = vpow2.f32 %v1021_v7  ;;  %v965_v27 = vsub.f32 %v3648_v12, %v930_v22 }
 0x27f   : > { %v3767_v29 = vpop.eup %3034  ;;  %v1025_v52 = vmul.f32 1.442695, %v965_v27 }
 0x280   : > { %v934_v32 = vpop.xlane.xlu0 %933  ;;  %1077 = vadd.xlane.f32.xlu0 %v3767_v29 }
 0x281   : > { %3040 = vpow2.f32 %v1025_v52  ;;  %v967_v31 = vsub.f32 %v3652_v5, %v934_v32 }
 0x283   : > { %v3771_v23 = vpop.eup %3036  ;;  %v1029_v2 = vmul.f32 1.442695, %v967_v31 }
 0x284   : > { %1081 = vadd.xlane.f32.xlu0 %v3771_v23 }
 0x285   : > { %3042 = vpow2.f32 %v1029_v2 }
 0x287   : > { %v3774_v26 = vpop.eup %3038 }
 0x288   : > { %1085 = vadd.xlane.f32.xlu0 %v3774_v26 }
 0x28b   : > { %v3777_v12 = vpop.eup %3040 }
 0x28c   : > { %1089 = vadd.xlane.f32.xlu0 %v3777_v12 }
 0x28f   : > { %v3780_v39 = vpop.eup %3042 }
 0x290   : > { %1093 = vadd.xlane.f32.xlu0 %v3780_v39 }
 0x2bd   : > { %v1036_v36 = vpop.xlane.xlu1 %1035 }
 0x2be   : > { %3044 = vrcp.f32 %v1036_v36 }
 0x2c1   : > { %v1034_v5 = vpop.xlane.xlu0 %1033 }
 0x2c2   : > { %3046 = vrcp.f32 %v1034_v5 }
 0x2c5   : > { %v1040_v42 = vpop.xlane.xlu1 %1039 }
 0x2c6   : > { %3048 = vrcp.f32 %v1040_v42  ;;  %v1038_v9 = vpop.xlane.xlu0 %1037 }
 0x2c7   : > { %3050 = vrcp.f32 %v1038_v9 }
 0x2c8   : > { %v3045_v40 = vpop.eup %3044 }
 0x2c9   : > { %v1130_v28 = vmul.f32 %v3045_v40, %v3660_v46 }
 0x2ca   : > { %v1044_v57 = vpop.xlane.xlu1 %1043 }
 0x2cb   : > { %3052 = vrcp.f32 %v1044_v57  ;;  %v1042_v4 = vpop.xlane.xlu0 %1041 }
 0x2cc   : > { %v3047_v48 = vpop.eup %3046  ;;  %3054 = vrcp.f32 %v1042_v4 }
 0x2cd   : > { %v1129_v10 = vmul.f32 %v3047_v48, %v3665_v56 }
 0x2ce   : > { %v1048_v13 = vpop.xlane.xlu1 %1047 }
 0x2cf   : > { %3056 = vrcp.f32 %v1048_v13  ;;  %2624 = vmatprep.mubr.f32.mxu1 %v1129_v10  ;;  %v1046_v53 = vpop.xlane.xlu0 %1045 }
 0x2d0   : > { %v3049_v41 = vpop.eup %3048  ;;  %3058 = vrcp.f32 %v1046_v53  ;;  %2625 = vmatmul.mubr.f32.vlgmr.msra.gmra.mrb[16].mxu1 %v1130_v28 }
 0x2d1   : > { %v3051_v25 = vpop.eup %3050  ;;  %v1132_v14 = vmul.f32 %v3049_v41, %v3670_v6 }
 0x2d2   : > { %v1052_v60 = vpop.xlane.xlu1 %1051  ;;  %v1131_v15 = vmul.f32 %v3051_v25, %v3673_v8 }
 0x2d3   : > { %3060 = vrcp.f32 %v1052_v60  ;;  %v1050_v33 = vpop.xlane.xlu0 %1049 }
 0x2d4   : > { %3062 = vrcp.f32 %v1050_v33  ;;  %2627 = vmatprep.mubr.f32.mxu1 %v1131_v15 }
 0x2d5   : > { %v3053_v56 = vpop.eup %3052  ;;  %2628 = vmatmul.mubr.f32.gmra.mrb[18].mxu1 %v1132_v14 }
 0x2d6   : > { %v3055_v46 = vpop.eup %3054  ;;  %v1056_v17 = vpop.xlane.xlu1 %1055  ;;  %v1134_v22 = vmul.f32 %v3053_v56, %v3679_v20 }
 0x2d7   : > { %3064 = vrcp.f32 %v1056_v17  ;;  %v1054_v43 = vpop.xlane.xlu0 %1053  ;;  %v1133_v7 = vmul.f32 %v3055_v46, %v3681_v11 }
 0x2d8   : > { %3066 = vrcp.f32 %v1054_v43 }
 0x2d9   : > { %v3057_v27 = vpop.eup %3056  ;;  %2630 = vmatprep.mubr.f32.mxu1 %v1133_v7 }
 0x2da   : > { %v3059_v8 = vpop.eup %3058  ;;  %2631 = vmatmul.mubr.f32.gmra.mrb[20].mxu1 %v1134_v22  ;;  %v1060_v52 = vpop.xlane.xlu1 %1059  ;;  %v1136_v31 = vmul.f32 %v3057_v27, %v3687_v61 }
 0x2db   : > { %3068 = vrcp.f32 %v1060_v52  ;;  %v1058_v6 = vpop.xlane.xlu0 %1057  ;;  %v1135_v32 = vmul.f32 %v3059_v8, %v3689_v34 }
 0x2dc   : > { %3070 = vrcp.f32 %v1058_v6 }
 0x2dd   : > { %v3061_v2 = vpop.eup %3060  ;;  %2633 = vmatprep.mubr.f32.mxu1 %v1135_v32 }
 0x2de   : > { %v3063_v36 = vpop.eup %3062  ;;  %2634 = vmatmul.mubr.f32.gmra.mrb[22].mxu1 %v1136_v31  ;;  %v1138_v20 = vmul.f32 %v3061_v2, %v3694_v35 }
 0x2df   : > { %v1137_v11 = vmul.f32 %v3063_v36, %v3696_v44  ;;  %v1064_v44 = vpop.xlane.xlu1 %1063 }
 0x2e0   : > { %3072 = vrcp.f32 %v1064_v44 }
 0x2e1   : > { %v3065_v5 = vpop.eup %3064  ;;  %2636 = vmatprep.mubr.f32.mxu1 %v1137_v11 }
 0x2e2   : > { %v3067_v42 = vpop.eup %3066  ;;  %2637 = vmatmul.mubr.f32.gmra.mrb[24].mxu1 %v1138_v20  ;;  %v1140_v57 = vmul.f32 %v3065_v5, %v3701_v47 }
 0x2e3   : > { %v1139_v9 = vmul.f32 %v3067_v42, %v3703_v45  ;;  %v1068_v35 = vpop.xlane.xlu1 %1067 }
 0x2e5   : > { %v3069_v34 = vpop.eup %3068  ;;  %2639 = vmatprep.mubr.f32.mxu1 %v1139_v9 }
 0x2e6   : > { %v3071_v40 = vpop.eup %3070  ;;  %2640 = vmatmul.mubr.f32.gmra.mrb[26].mxu1 %v1140_v57  ;;  %v1142_v4 = vmul.f32 %v3069_v34, %v3708_v50 }
 0x2e7   : > { %v1141_v61 = vmul.f32 %v3071_v40, %v3710_v38  ;;  %v1072_v48 = vpop.xlane.xlu1 %1071 }
 0x2e9   : > { %2642 = vmatprep.mubr.f32.mxu1 %v1141_v61 }
 0x2ea   : > { %2643 = vmatmul.mubr.f32.gmra.mrb[28].mxu1 %v1142_v4  ;;  %v3073_v53 = vpop.eup %3072 }
 0x2eb   : > { %v1076_v10 = vpop.xlane.xlu1 %1075  ;;  %v1144_v60 = vmul.f32 %v3073_v53, %v3715_v63 }
 0x2ef   : > { %v1080_v47 = vpop.xlane.xlu1 %1079 }
 0x2f3   : > { %v1084_v41 = vpop.xlane.xlu1 %1083 }
 0x2f7   : > { %v1088_v46 = vpop.xlane.xlu1 %1087 }
 0x2fb   : > { %v1092_v52 = vpop.xlane.xlu1 %1091 }
 0x2fd   : > { %v1062_v28 = vpop.xlane.xlu0 %1061 }
 0x2fe   : > { %3074 = vrcp.f32 %v1062_v28 }
 0x2ff   : > { %3076 = vrcp.f32 %v1068_v35  ;;  %v1096_v2 = vpop.xlane.xlu1 %1095 }
 0x301   : > { %v1066_v45 = vpop.xlane.xlu0 %1065 }
 0x302   : > { %3078 = vrcp.f32 %v1066_v45 }
 0x303   : > { %3080 = vrcp.f32 %v1072_v48 }
 0x305   : > { %v1070_v13 = vpop.xlane.xlu0 %1069 }
 0x306   : > { %3082 = vrcp.f32 %v1070_v13 }
 0x307   : > { %3084 = vrcp.f32 %v1076_v10  ;;  %v3262_v10 = vmov 127  }
 0x308   : > { %v3075_v38 = vpop.eup %3074  ;;  %2979 = vset.pattern.permute.xlu1 %v3262_v10  ;;  %2978 = vset.pattern.permute.xlu0 %v3262_v10 }
 0x309   : > { %v1074_v50 = vpop.xlane.xlu0 %1073  ;;  %v1143_v25 = vmul.f32 %v3075_v38, %v3748_v16  ;;  %v3077_v15 = vpop.eup %3076 }
 0x30a   : > { %3086 = vrcp.f32 %v1074_v50  ;;  %v1146_v17 = vmul.f32 %v3077_v15, %v3719_v51 }
 0x30b   : > { %2645 = vmatprep.mubr.f32.mxu1 %v1143_v25  ;;  %3088 = vrcp.f32 %v1080_v47  ;;  %v289_v25 = vld [vmem:[%s4160_s2 + $0xb] sm:$0x3] }
 0x30c   : > { %v3079_v33 = vpop.eup %3078  ;;  %2646 = vmatmul.mubr.f32.gmra.mrb[30].mxu1 %v1144_v60  ;;  %v3837_v60 = vrot.slane %v289_v25, %v3477_v59 }
 0x30d   : > { %v1078_v14 = vpop.xlane.xlu0 %1077  ;;  %v1145_v56 = vmul.f32 %v3079_v33, %v3755_v3  ;;  %v3081_v43 = vpop.eup %3080 }
 0x30e   : > { %3090 = vrcp.f32 %v1078_v14  ;;  %v1148_v22 = vmul.f32 %v3081_v43, %v3723_v55 }
 0x30f   : > { %2648 = vmatprep.mubr.f32.mxu1 %v1145_v56  ;;  %3092 = vrcp.f32 %v1084_v41  ;;  %v3846_v56 = vrot.slane %v289_v25, %v727_v49 }
 0x310   : > { %v3083_v7 = vpop.eup %3082  ;;  %2649 = vmatmul.mubr.f32.gmra.mrb[32].mxu1 %v1146_v17 }
 0x311   : > { %v1082_v16 = vpop.xlane.xlu0 %1081  ;;  %v1147_v63 = vmul.f32 %v3083_v7, %v3759_v54  ;;  %v3085_v27 = vpop.eup %3084 }
 0x312   : > { %3094 = vrcp.f32 %v1082_v16  ;;  %v1150_v6 = vmul.f32 %v3085_v27, %v3727_v24 }
 0x313   : > { %2651 = vmatprep.mubr.f32.mxu1 %v1147_v63  ;;  %3096 = vrcp.f32 %v1088_v46  ;;  %v3851_v46 = vld [vmem:[%s4160_s2 + $0xa] ss:$0 sm:$0xff] }
 0x314   : > { %v3087_v8 = vpop.eup %3086  ;;  %2652 = vmatmul.mubr.f32.gmra.mrb[34].mxu1 %v1148_v22 }
 0x315   : > { %v1086_v3 = vpop.xlane.xlu0 %1085  ;;  %v1149_v51 = vmul.f32 %v3087_v8, %v3763_v19  ;;  %v3089_v32 = vpop.eup %3088 }
 0x316   : > { %3098 = vrcp.f32 %v1086_v3  ;;  %v1152_v36 = vmul.f32 %v3089_v32, %v3731_v30 }
 0x317   : > { %2654 = vmatprep.mubr.f32.mxu1 %v1149_v51  ;;  %3100 = vrcp.f32 %v1092_v52 }
 0x318   : > { %v3091_v31 = vpop.eup %3090  ;;  %2655 = vmatmul.mubr.f32.gmra.mrb[36].mxu1 %v1150_v6 }
 0x319   : > { %v1090_v54 = vpop.xlane.xlu0 %1089  ;;  %v1151_v55 = vmul.f32 %v3091_v31, %v3767_v29  ;;  %v3093_v11 = vpop.eup %3092 }
 0x31a   : > { %3102 = vrcp.f32 %v1090_v54  ;;  %v1154_v5 = vmul.f32 %v3093_v11, %v3736_v37 }
 0x31b   : > { %2657 = vmatprep.mubr.f32.mxu1 %v1151_v55  ;;  %3104 = vrcp.f32 %v1096_v2 }
 0x31c   : > { %v3095_v20 = vpop.eup %3094  ;;  %2658 = vmatmul.mubr.f32.gmra.mrb[38].mxu1 %v1152_v36 }
 0x31d   : > { %v1094_v19 = vpop.xlane.xlu0 %1093  ;;  %v1153_v24 = vmul.f32 %v3095_v20, %v3771_v23  ;;  %v3097_v42 = vpop.eup %3096 }
 0x31e   : > { %3106 = vrcp.f32 %v1094_v19  ;;  %v1156_v57 = vmul.f32 %v3097_v42, %v3740_v18  ;;  %v291_v18 = vld [vmem:[%s4161_s3] sm:$0xff] }
 0x31f   : > { %2660 = vmatprep.mubr.f32.mxu1 %v1153_v24 }
 0x320   : > { %v3099_v9 = vpop.eup %3098  ;;  %2661 = vmatmul.mubr.f32.gmra.mrb[40].mxu1 %v1154_v5 }
 0x321   : > { %v1155_v29 = vmul.f32 %v3099_v9, %v3774_v26  ;;  %v3101_v30 = vpop.eup %3100 }
 0x322   : > { %v1158_v61 = vmul.f32 %v3101_v30, %v3744_v21  ;;  %v292_v21 = vld [vmem:[%s4161_s3 + $0x8] sm:$0xff] }
 0x323   : > { %2663 = vmatprep.mubr.f32.mxu1 %v1155_v29  ;;  %v2887_v26 = vpack.c.bf16 %v292_v21, %v291_v18 }
 0x324   : > { %v3103_v34 = vpop.eup %3102  ;;  %2664 = vmatmul.mubr.f32.gmra.mrb[42].mxu1 %v1156_v57 }
 0x325   : > { %v1157_v40 = vmul.f32 %v3103_v34, %v3777_v12  ;;  %v3105_v23 = vpop.eup %3104  ;;  %2888 = vmatprep.subr.bf16.mxu0 %v2887_v26 }
 0x326   : > { %v1160_v44 = vmul.f32 %v3105_v23, %v3750_v62  ;;  %2890 = vmatpush3.bf16.msra.mxu0 %v2887_v26 }
 0x327   : > { %2666 = vmatprep.mubr.f32.mxu1 %v1157_v40 }
 0x328   : > { %v3107_v4 = vpop.eup %3106  ;;  %2667 = vmatmul.mubr.f32.gmra.mrb[44].mxu1 %v1158_v61 }
 0x329   : > { %v1159_v37 = vmul.f32 %v3107_v4, %v3780_v39 }
 0x32b   : > { %2669 = vmatprep.mubr.f32.mxu1 %v1159_v37 }
 0x32c   : > { %2670 = vmatmul.mubr.f32.gmra.mrb[46].mxu1 %v1160_v44 }
 0x32d   : > { %2704 = vmatprep.mubr.msk.f32.mxu1 %vm3258_vm0, %v3259_v1  ;;  %vm1478_vm0 = vcmask 130048  }
 0x32e   : > { %vm3868_vm5 = vmpackc.low %vm1478_vm0, %vm1478_vm0 }
 0x3a3   : > { %v2626_v12 = vpop.f32.mrb[16].mxu1 }
 0x3a4   : > { %v1227_v39 = vpop.f32.mrb[17].mxu1  ;;  %v1391_v33 = vmul.f32 %v2626_v12, %v3837_v60 }
 0x3a5   : > { %v1390_v17 = vmul.f32 %v3837_v60, %v1227_v39 }
 0x3a6   : > { %v1411_v7 = vadd.f32 %v3851_v46, %v1391_v33 }
 0x3a7   : > { %v1410_v27 = vadd.f32 %v3851_v46, %v1390_v17 }
 0x3a8   : > { %v2629_v35 = vpop.f32.mrb[18].mxu1 }
 0x3a9   : > { %v1237_v62 = vpop.f32.mrb[19].mxu1  ;;  %v1393_v16 = vmul.f32 %v2629_v35, %v3837_v60 }
 0x3aa   : > { %v1392_v58 = vmul.f32 %v3837_v60, %v1237_v62 }
 0x3ab   : > { %v1413_v51 = vadd.f32 %v3851_v46, %v1393_v16 }
 0x3ac   : > { %v1412_v55 = vadd.f32 %v3851_v46, %v1392_v58 }
 0x3ad   : > { %v2632_v48 = vpop.f32.mrb[20].mxu1 }
 0x3ae   : > { %v1247_v1 = vpop.f32.mrb[21].mxu1  ;;  %v1395_v6 = vmul.f32 %v2632_v48, %v3837_v60 }
 0x3af   : > { %v1394_v2 = vmul.f32 %v3837_v60, %v1247_v1 }
 0x3b0   : > { %v1415_v9 = vadd.f32 %v3851_v46, %v1395_v6 }
 0x3b1   : > { %v2635_v28 = vpop.f32.mrb[22].mxu1  ;;  %v1414_v40 = vadd.f32 %v3851_v46, %v1394_v2 }
 0x3b2   : > { %v1257_v45 = vpop.f32.mrb[23].mxu1  ;;  %v1397_v29 = vmul.f32 %v2635_v28, %v3837_v60 }
 0x3b3   : > { %v1396_v61 = vmul.f32 %v3837_v60, %v1257_v45 }
 0x3b4   : > { %v1417_v26 = vadd.f32 %v3851_v46, %v1397_v29 }
 0x3b5   : > { %v2638_v47 = vpop.f32.mrb[24].mxu1  ;;  %v1416_v48 = vadd.f32 %v3851_v46, %v1396_v61 }
 0x3b6   : > { %v3823_v13 = vpop.f32.mrb[25].mxu1  ;;  %v1399_v12 = vmul.f32 %v2638_v47, %v3837_v60 }
 0x3b7   : > { %v1398_v10 = vmul.f32 %v3837_v60, %v3823_v13 }
 0x3b8   : > { %v1419_v47 = vadd.f32 %v3851_v46, %v1399_v12 }
 0x3b9   : > { %v3825_v53 = vpop.f32.mrb[26].mxu1  ;;  %v1418_v13 = vadd.f32 %v3851_v46, %v1398_v10 }
 0x3ba   : > { %v3827_v38 = vpop.f32.mrb[27].mxu1 }
 0x3bd   : > { %v3829_v41 = vpop.f32.mrb[28].mxu1 }
 0x3be   : > { %v3831_v50 = vpop.f32.mrb[29].mxu1 }
 0x3df   : > { %v3839_v15 = vpop.f32.mrb[30].mxu1 }
 0x3e0   : > { %v3842_v14 = vpop.f32.mrb[31].mxu1 }
 0x3e3   : > { %v2650_v43 = vpop.f32.mrb[32].mxu1 }
 0x3e4   : > { %v1431_v63 = vmul.f32 %v2650_v43, %v3846_v56  ;;  %v1307_v22 = vpop.f32.mrb[33].mxu1  ;;  %v1401_v43 = vmul.f32 %v3825_v53, %v3837_v60 }
 0x3e5   : > { %v1430_v49 = vmul.f32 %v3846_v56, %v1307_v22  ;;  %v1400_v22 = vmul.f32 %v3837_v60, %v3827_v38 }
 0x3e6   : > { %v1447_v8 = vadd.f32 %v1431_v63, %v1411_v7 }
 0x3e7   : > { %v1446_v52 = vadd.f32 %v1430_v49, %v1410_v27  ;;  %v2653_v3 = vpop.f32.mrb[34].mxu1 }
 0x3e8   : > { %v1463_v32 = vmax.f32 %v1447_v8, 0.0  ;;  %v1433_v31 = vmul.f32 %v2653_v3, %v3846_v56  ;;  %v1317_v54 = vpop.f32.mrb[35].mxu1  ;;  %v1421_v3 = vadd.f32 %v3851_v46, %v1401_v43 }
 0x3e9   : > { %v1462_v36 = vmax.f32 %v1446_v52, 0.0  ;;  %v1432_v11 = vmul.f32 %v3846_v56, %v1317_v54  ;;  %v1402_v54 = vmul.f32 %v3837_v60, %v3831_v50 }
 0x3ea   : > { %v1449_v20 = vadd.f32 %v1433_v31, %v1413_v51  ;;  %v1403_v51 = vmul.f32 %v3829_v41, %v3837_v60  ;;  %v1420_v31 = vadd.f32 %v3851_v46, %v1400_v22 }
 0x3eb   : > { %v2856_v24 = vpack.c.bf16 %v1463_v32, %v1462_v36  ;;  %v1448_v5 = vadd.f32 %v1432_v11, %v1412_v55  ;;  %v2656_v42 = vpop.f32.mrb[36].mxu1  ;;  %2711 = vmatprep.mubr.msk.f32.mxu0 %vm1478_vm0, %v1462_v36  ;;  %v1422_v50 = vadd.f32 %v3851_v46, %v1402_v54 }
 0x3ec   : > { %v1465_v57 = vmax.f32 %v1449_v20, 0.0  ;;  %v1435_v30 = vmul.f32 %v2656_v42, %v3846_v56  ;;  %v1327_v34 = vpop.f32.mrb[37].mxu1  ;;  %2712 = vmatmul.mubr.msk.f32.vlgmr.msra.gmra.mrb[2].mxu0 %vm1478_vm0, %v1463_v32  ;;  %v1423_v41 = vadd.f32 %v3851_v46, %v1403_v51 }
 0x3ed   : > { %v1464_v23 = vmax.f32 %v1448_v5, 0.0  ;;  %v1434_v4 = vmul.f32 %v3846_v56, %v1327_v34  ;;  %2858 = vmatpush3.bf16.xpose.msk.msra.mxu1 %vm3868_vm5, %v2856_v24  ;;  %v1405_v5 = vmul.f32 %v3839_v15, %v3837_v60 }
 0x3ee   : > { %v1451_v37 = vadd.f32 %v1435_v30, %v1415_v9  ;;  %2859 = vmatprep.subr.bf16.mxu1 %v3257_v0 }
 0x3ef   : > { %v2860_v44 = vpack.c.bf16 %v1465_v57, %v1464_v23  ;;  %v1450_v18 = vadd.f32 %v1434_v4, %v1414_v40  ;;  %v2659_v21 = vpop.f32.mrb[38].mxu1  ;;  %2714 = vmatprep.mubr.msk.f32.mxu0 %vm1478_vm0, %v1464_v23  ;;  %v1425_v4 = vadd.f32 %v3851_v46, %v1405_v5 }
 0x3f0   : > { %v1467_v39 = vmax.f32 %v1451_v37, 0.0  ;;  %v1437_v35 = vmul.f32 %v2659_v21, %v3846_v56  ;;  %v1337_v62 = vpop.f32.mrb[39].mxu1  ;;  %2715 = vmatmul.mubr.msk.f32.gmra.mrb[4].mxu0 %vm1478_vm0, %v1465_v57  ;;  %v1404_v57 = vmul.f32 %v3837_v60, %v3842_v14 }
 0x3f1   : > { %v1466_v1 = vmax.f32 %v1450_v18, 0.0  ;;  %v1436_v28 = vmul.f32 %v3846_v56, %v1337_v62 }
 0x3f2   : > { %v1453_v45 = vadd.f32 %v1437_v35, %v1417_v26  ;;  %v1424_v14 = vadd.f32 %v3851_v46, %v1404_v57 }
 0x3f3   : > { %v2864_v25 = vpack.c.bf16 %v1467_v39, %v1466_v1  ;;  %v1452_v33 = vadd.f32 %v1436_v28, %v1416_v48  ;;  %v2662_v17 = vpop.f32.mrb[40].mxu1  ;;  %2717 = vmatprep.mubr.msk.f32.mxu0 %vm1478_vm0, %v1466_v1 }
 0x3f4   : > { %v1469_v7 = vmax.f32 %v1453_v45, 0.0  ;;  %v1439_v16 = vmul.f32 %v2662_v17, %v3846_v56  ;;  %v1347_v63 = vpop.f32.mrb[41].mxu1  ;;  %2718 = vmatmul.mubr.msk.f32.gmra.mrb[6].mxu0 %vm1478_vm0, %v1467_v39 }
 0x3f5   : > { %v1468_v27 = vmax.f32 %v1452_v33, 0.0  ;;  %v1438_v58 = vmul.f32 %v3846_v56, %v1347_v63  ;;  %2862 = vmatpush3.bf16.xpose.msk.msra.mxu1 %vm3868_vm5, %v2860_v44 }
 0x3f6   : > { %v1455_v49 = vadd.f32 %v1439_v16, %v1419_v47  ;;  %2863 = vmatprep.subr.bf16.mxu1 %v3257_v0 }
 0x3f7   : > { %v2868_v53 = vpack.c.bf16 %v1469_v7, %v1468_v27  ;;  %v1454_v8 = vadd.f32 %v1438_v58, %v1418_v13  ;;  %v2665_v52 = vpop.f32.mrb[42].mxu1  ;;  %2720 = vmatprep.mubr.msk.f32.mxu0 %vm1478_vm0, %v1468_v27 }
 0x3f8   : > { %v1471_v38 = vmax.f32 %v1455_v49, 0.0  ;;  %v1441_v6 = vmul.f32 %v2665_v52, %v3846_v56  ;;  %v1357_v32 = vpop.f32.mrb[43].mxu1  ;;  %2721 = vmatmul.mubr.msk.f32.gmra.mrb[8].mxu0 %vm1478_vm0, %v1469_v7 }
 0x3f9   : > { %v1470_v55 = vmax.f32 %v1454_v8, 0.0  ;;  %v1440_v2 = vmul.f32 %v3846_v56, %v1357_v32 }
 0x3fa   : > { %v1457_v36 = vadd.f32 %v1441_v6, %v1421_v3 }
 0x3fb   : > { %v2872_v11 = vpack.c.bf16 %v1471_v38, %v1470_v55  ;;  %v1456_v20 = vadd.f32 %v1440_v2, %v1420_v31  ;;  %v2668_v24 = vpop.f32.mrb[44].mxu1  ;;  %2723 = vmatprep.mubr.msk.f32.mxu0 %vm1478_vm0, %v1470_v55 }
 0x3fc   : > { %v1473_v42 = vmax.f32 %v1457_v36, 0.0  ;;  %v1443_v9 = vmul.f32 %v2668_v24, %v3846_v56  ;;  %v1367_v29 = vpop.f32.mrb[45].mxu1  ;;  %2724 = vmatmul.mubr.msk.f32.gmra.mrb[10].mxu0 %vm1478_vm0, %v1471_v38 }
 0x3fd   : > { %v1472_v30 = vmax.f32 %v1456_v20, 0.0  ;;  %v1442_v34 = vmul.f32 %v3846_v56, %v1367_v29  ;;  %2866 = vmatpush3.bf16.xpose.msk.msra.mxu1 %vm3868_vm5, %v2864_v25 }
 0x3fe   : > { %v1459_v40 = vadd.f32 %v1443_v9, %v1423_v41  ;;  %2867 = vmatprep.subr.bf16.mxu1 %v3257_v0  ;;  %v3172_v41 = vld [vmem:[%s3374_s9 + $0x8] sm:$0xff]  ;;  %v3173_v9 = vld [vmem:[%s3374_s9] sm:$0xff] }
 0x3ff   : > { %v2876_v15 = vpack.c.bf16 %v1473_v42, %v1472_v30  ;;  %v1458_v61 = vadd.f32 %v1442_v34, %v1422_v50  ;;  %v2671_v23 = vpop.f32.mrb[46].mxu1  ;;  %2726 = vmatprep.mubr.msk.f32.mxu0 %vm1478_vm0, %v1472_v30  ;;  %v3174_v34 = vld [vmem:[%s3374_s9 + $0x18] sm:$0xff] }
 0x400   : > { %v1475_v37 = vmax.f32 %v1459_v40, 0.0  ;;  %v1445_v44 = vmul.f32 %v2671_v23, %v3846_v56  ;;  %v1377_v60 = vpop.f32.mrb[47].mxu1  ;;  %2727 = vmatmul.mubr.msk.f32.gmra.mrb[12].mxu0 %vm1478_vm0, %v1473_v42 }
 0x401   : > { %v1474_v18 = vmax.f32 %v1458_v61, 0.0  ;;  %v1444_v21 = vmul.f32 %v3846_v56, %v1377_v60  ;;  %v290_v56 = vld [vmem:[%s4160_s2 + $0xd] sm:$0x1] }
 0x402   : > { %v1461_v26 = vadd.f32 %v1445_v44, %v1425_v4 }
 0x403   : > { %v2880_v12 = vpack.c.bf16 %v1475_v37, %v1474_v18  ;;  %v1460_v39 = vadd.f32 %v1444_v21, %v1424_v14  ;;  %2729 = vmatprep.mubr.msk.f32.mxu0 %vm1478_vm0, %v1474_v18 }
 0x404   : > { %v1477_v35 = vmax.f32 %v1461_v26, 0.0  ;;  %2730 = vmatmul.mubr.msk.f32.gmra.mrb[14].mxu0 %vm1478_vm0, %v1475_v37  ;;  %v3175_v37 = vld [vmem:[%s3374_s9 + $0x10] sm:$0xff] }
 0x405   : > { %v1476_v62 = vmax.f32 %v1460_v39, 0.0  ;;  %2870 = vmatpush3.bf16.xpose.msk.msra.mxu1 %vm3868_vm5, %v2868_v53  ;;  %v3176_v39 = vld [vmem:[%s3374_s9 + $0x28] sm:$0xff] }
 0x406   : > { %2871 = vmatprep.subr.bf16.mxu1 %v3257_v0 }
 0x407   : > { %v2884_v48 = vpack.c.bf16 %v1477_v35, %v1476_v62  ;;  %2732 = vmatprep.mubr.msk.f32.mxu0 %vm1478_vm0, %v1476_v62 }
 0x408   : > { %2733 = vmatmul.mubr.msk.f32.gmra.mrb[16].mxu0 %vm1478_vm0, %v1477_v35 }
 0x40d   : > { %2874 = vmatpush3.bf16.xpose.msk.msra.mxu1 %vm3868_vm5, %v2872_v11 }
 0x40e   : > { %2875 = vmatprep.subr.bf16.mxu1 %v3257_v0 }
 0x415   : > { %2878 = vmatpush3.bf16.xpose.msk.msra.mxu1 %vm3868_vm5, %v2876_v15 }
 0x416   : > { %2879 = vmatprep.subr.bf16.mxu1 %v3257_v0 }
 0x41d   : > { %2882 = vmatpush3.bf16.xpose.msk.msra.mxu1 %vm3868_vm5, %v2880_v12 }
 0x41e   : > { %2883 = vmatprep.subr.bf16.mxu1 %v3257_v0 }
 0x425   : > { %2886 = vmatpush3.bf16.xpose.msk.msra.mxu1 %vm3868_vm5, %v2884_v48 }
 0x42c   : > { %2705 = vmatmul.mubr.msk.f32.vlgmr.msra.gmra.mrb[48].mxu1 %vm1478_vm0, %v290_v56 }
 0x4bf   : > { %v2713_v46 = vpop.f32.mrb[2].mxu0 }
 0x4c0   : > { %1752 = vperm.xlu1 %2979, %v2713_v46   ;;  %v1666_v10 = vpop.f32.mrb[3].mxu0 }
 0x4c1   : > { %v2891_v1 = vpack.c.bf16 %v2713_v46, %v1666_v10  ;;  %1747 = vperm.xlu0 %2978, %v1666_v10  }
 0x4c3   : > { %v2716_v28 = vpop.f32.mrb[4].mxu0  ;;  %2892 = vmatprep.subr.bf16.mxu0 %v2891_v1 }
 0x4c4   : > { %2894 = vmatpush3.bf16.msra.mxu0 %v2891_v1  ;;  %1762 = vperm.xlu1 %2979, %v2716_v28   ;;  %v1676_v45 = vpop.f32.mrb[5].mxu0 }
 0x4c5   : > { %v2895_v0 = vpack.c.bf16 %v2716_v28, %v1676_v45 }
 0x4c7   : > { %v2719_v25 = vpop.f32.mrb[6].mxu0  ;;  %2896 = vmatprep.subr.bf16.mxu0 %v2895_v0 }
 0x4c8   : > { %1757 = vperm.xlu1 %2979, %v1676_v45   ;;  %v1686_v19 = vpop.f32.mrb[7].mxu0  ;;  %2898 = vmatpush3.bf16.msra.mxu0 %v2895_v0  ;;  %v3177_v45 = vld [vmem:[%s3374_s9 + $0x20] sm:$0xff] }
 0x4c9   : > { %v2899_v33 = vpack.c.bf16 %v2719_v25, %v1686_v19 }
 0x4cb   : > { %v2722_v17 = vpop.f32.mrb[8].mxu0  ;;  %2900 = vmatprep.subr.bf16.mxu0 %v2899_v33 }
 0x4cc   : > { %1772 = vperm.xlu1 %2979, %v2719_v25   ;;  %v1696_v47 = vpop.f32.mrb[9].mxu0  ;;  %2902 = vmatpush3.bf16.msra.mxu0 %v2899_v33 }
 0x4cd   : > { %v2903_v43 = vpack.c.bf16 %v2722_v17, %v1696_v47 }
 0x4cf   : > { %v2725_v7 = vpop.f32.mrb[10].mxu0  ;;  %2904 = vmatprep.subr.bf16.mxu0 %v2903_v43 }
 0x4d0   : > { %1767 = vperm.xlu1 %2979, %v1686_v19   ;;  %2906 = vmatpush3.bf16.msra.mxu0 %v2903_v43  ;;  %v1706_v16 = vpop.f32.mrb[11].mxu0 }
 0x4d1   : > { %1792 = vperm.xlu0 %2978, %v2725_v7   ;;  %v2907_v63 = vpack.c.bf16 %v2725_v7, %v1706_v16  ;;  %v3178_v7 = vld [vmem:[%s3374_s9 + $0x38] sm:$0xff] }
 0x4d3   : > { %v2728_v13 = vpop.f32.mrb[12].mxu0  ;;  %2908 = vmatprep.subr.bf16.mxu0 %v2907_v63 }
 0x4d4   : > { %1782 = vperm.xlu1 %2979, %v2722_v17   ;;  %2910 = vmatpush3.bf16.msra.mxu0 %v2907_v63  ;;  %v1716_v22 = vpop.f32.mrb[13].mxu0 }
 0x4d5   : > { %1802 = vperm.xlu0 %2978, %v2728_v13   ;;  %v2911_v27 = vpack.c.bf16 %v2728_v13, %v1716_v22 }
 0x4d7   : > { %v2731_v58 = vpop.f32.mrb[14].mxu0  ;;  %2912 = vmatprep.subr.bf16.mxu0 %v2911_v27 }
 0x4d8   : > { %1777 = vperm.xlu1 %2979, %v1696_v47   ;;  %2914 = vmatpush3.bf16.msra.mxu0 %v2911_v27  ;;  %v1726_v49 = vpop.f32.mrb[15].mxu0 }
 0x4d9   : > { %1812 = vperm.xlu0 %2978, %v2731_v58   ;;  %v2915_v53 = vpack.c.bf16 %v2731_v58, %v1726_v49 }
 0x4db   : > { %v2734_v8 = vpop.f32.mrb[16].mxu0  ;;  %2916 = vmatprep.subr.bf16.mxu0 %v2915_v53 }
 0x4dc   : > { %1787 = vperm.xlu1 %2979, %v1706_v16   ;;  %2918 = vmatpush3.bf16.msra.mxu0 %v2915_v53  ;;  %v1736_v52 = vpop.f32.mrb[17].mxu0 }
 0x4dd   : > { %1822 = vperm.xlu0 %2978, %v2734_v8   ;;  %v2919_v3 = vpack.c.bf16 %v2734_v8, %v1736_v52  ;;  %v3179_v8 = vld [vmem:[%s3374_s9 + $0x30] sm:$0xff] }
 0x4df   : > { %2920 = vmatprep.subr.bf16.mxu0 %v2919_v3 }
 0x4e0   : > { %1797 = vperm.xlu1 %2979, %v1716_v22   ;;  %2922 = vmatpush3.bf16.msra.mxu0 %v2919_v3  ;;  %v3180_v3 = vld [vmem:[%s3374_s9 + $0x48] sm:$0xff] }
 0x4e4   : > { %1807 = vperm.xlu1 %2979, %v1726_v49  }
 0x4e8   : > { %1817 = vperm.xlu1 %2979, %v1736_v52  }
 0x4ff   : > { %v1596_v51 = vpop.f32.mrb[48].mxu1 }
 0x500   : > { %v2706_v38 = vpop.f32.mrb[49].mxu1  ;;  %v3957_v6 = vrot.slane %v1596_v51, %v3477_v59 }
 0x53f   : > { %v1753_v32 = vpop.permute.xlu1 %1752 }
 0x540   : > { %v1830_v31 = vadd.f32 %v3957_v6, %v1753_v32  ;;  %v1748_v54 = vpop.permute.xlu0 %1747 }
 0x541   : > { %v1829_v55 = vadd.f32 %v3957_v6, %v1748_v54 }
 0x542   : > { %vm1846_vm6 = vcmp.gt.f32.partialorder %v1830_v31, 0.0  ;;  %v1862_v2 = vmul.f32 0.2, %v1830_v31 }
 0x543   : > { %vm1845_vm7 = vcmp.gt.f32.partialorder %v1829_v55, 0.0  ;;  %v1861_v36 = vmul.f32 0.2, %v1829_v55  ;;  %v1763_v11 = vpop.permute.xlu1 %1762 }
 0x544   : > { %v1832_v20 = vadd.f32 %v3957_v6, %v1763_v11  ;;  %v1878_v24 = vsel %vm1846_vm6, %v1830_v31, %v1862_v2  ;;  %v3181_v11 = vld [vmem:[%s3374_s9 + $0x40] sm:$0xff] }
 0x545   : > { %v3963_v5 = vadd.f32 %v3172_v41, %v1878_v24  ;;  %v1877_v59 = vsel %vm1845_vm7, %v1829_v55, %v1861_v36  ;;  %v3182_v24 = vld [vmem:[%s3374_s9 + $0x58] sm:$0xff] }
 0x546   : > { %vm1848_vm8 = vcmp.gt.f32.partialorder %v1832_v20, 0.0  ;;  %v1864_v42 = vmul.f32 0.2, %v1832_v20  ;;  %v3966_v29 = vadd.f32 %v3173_v9, %v1877_v59 }
 0x547   : > { %v1758_v50 = vpop.permute.xlu1 %1757  ;;  %1911 = vmax.xlane.f32.xlu0 %v3963_v5 }
 0x548   : > { %v1831_v57 = vadd.f32 %v3957_v6, %v1758_v50  ;;  %1909 = vmax.xlane.f32.xlu1 %v3966_v29  ;;  %v1880_v30 = vsel %vm1848_vm8, %v1832_v20, %v1864_v42 }
 0x549   : > { %v3972_v40 = vadd.f32 %v3174_v34, %v1880_v30  ;;  %v3183_v34 = vld [vmem:[%s3374_s9 + $0x50] sm:$0xff] }
 0x54a   : > { %vm1847_vm9 = vcmp.gt.f32.partialorder %v1831_v57, 0.0  ;;  %v1863_v15 = vmul.f32 0.2, %v1831_v57 }
 0x54b   : > { %v1773_v61 = vpop.permute.xlu1 %1772 }
 0x54c   : > { %v1834_v23 = vadd.f32 %v3957_v6, %v1773_v61  ;;  %1915 = vmax.xlane.f32.xlu1 %v3972_v40  ;;  %v1879_v4 = vsel %vm1847_vm9, %v1831_v57, %v1863_v15  ;;  %v3184_v61 = vld [vmem:[%s3374_s9 + $0x68] sm:$0xff] }
 0x54d   : > { %v3977_v44 = vadd.f32 %v3175_v37, %v1879_v4 }
 0x54e   : > { %vm1850_vm10 = vcmp.gt.f32.partialorder %v1834_v23, 0.0  ;;  %v1866_v60 = vmul.f32 0.2, %v1834_v23 }
 0x54f   : > { %v1768_v14 = vpop.permute.xlu1 %1767  ;;  %1913 = vmax.xlane.f32.xlu0 %v3977_v44 }
 0x550   : > { %v1833_v18 = vadd.f32 %v3957_v6, %v1768_v14  ;;  %v1793_v21 = vpop.permute.xlu0 %1792  ;;  %v1882_v26 = vsel %vm1850_vm10, %v1834_v23, %v1866_v60 }
 0x551   : > { %v1838_v12 = vadd.f32 %v3957_v6, %v1793_v21  ;;  %v3983_v35 = vadd.f32 %v3176_v39, %v1882_v26  ;;  %v3185_v21 = vld [vmem:[%s3374_s9 + $0x60] sm:$0xff] }
 0x552   : > { %vm1849_vm11 = vcmp.gt.f32.partialorder %v1833_v18, 0.0  ;;  %v1865_v62 = vmul.f32 0.2, %v1833_v18 }
 0x553   : > { %v1783_v48 = vpop.permute.xlu1 %1782  ;;  %1919 = vmax.xlane.f32.xlu1 %v3983_v35  ;;  %v1870_v1 = vmul.f32 0.2, %v1838_v12  ;;  %vm1854_vm12 = vcmp.gt.f32.partialorder %v1838_v12, 0.0 }
 0x554   : > { %v1836_v56 = vadd.f32 %v3957_v6, %v1783_v48  ;;  %v1803_v46 = vpop.permute.xlu0 %1802  ;;  %v1881_v10 = vsel %vm1849_vm11, %v1833_v18, %v1865_v62 }
 0x555   : > { %v1840_v28 = vadd.f32 %v3957_v6, %v1803_v46  ;;  %v3989_v0 = vadd.f32 %v3177_v45, %v1881_v10  ;;  %v1886_v63 = vsel %vm1854_vm12, %v1838_v12, %v1870_v1  ;;  %v3186_v12 = vld [vmem:[%s3374_s9 + $0x78] sm:$0xff] }
 0x556   : > { %vm1852_vm13 = vcmp.gt.f32.partialorder %v1836_v56, 0.0  ;;  %v1868_v25 = vmul.f32 0.2, %v1836_v56  ;;  %v4003_v51 = vadd.f32 %v3180_v3, %v1886_v63 }
 0x557   : > { %v1778_v19 = vpop.permute.xlu1 %1777  ;;  %1917 = vmax.xlane.f32.xlu0 %v3989_v0  ;;  %v1872_v43 = vmul.f32 0.2, %v1840_v28  ;;  %vm1856_vm14 = vcmp.gt.f32.partialorder %v1840_v28, 0.0 }
 0x558   : > { %v1835_v33 = vadd.f32 %v3957_v6, %v1778_v19  ;;  %v1813_v17 = vpop.permute.xlu0 %1812  ;;  %v1884_v47 = vsel %vm1852_vm13, %v1836_v56, %v1868_v25  ;;  %v3187_v56 = vld [vmem:[%s3374_s9 + $0x70] sm:$0xff] }
 0x559   : > { %v3994_v16 = vadd.f32 %v3178_v7, %v1884_v47  ;;  %v1842_v22 = vadd.f32 %v3957_v6, %v1813_v17  ;;  %v1888_v38 = vsel %vm1856_vm14, %v1840_v28, %v1872_v43 }
 0x55a   : > { %vm1851_vm15 = vcmp.gt.f32.partialorder %v1835_v33, 0.0  ;;  %v1867_v13 = vmul.f32 0.2, %v1835_v33  ;;  %v4013_v41 = vadd.f32 %v3182_v24, %v1888_v38 }
 0x55b   : > { %v1788_v27 = vpop.permute.xlu1 %1787  ;;  %1923 = vmax.xlane.f32.xlu1 %v3994_v16  ;;  %v1874_v32 = vmul.f32 0.2, %v1842_v22  ;;  %vm1858_vm2 = vcmp.gt.f32.partialorder %v1842_v22, 0.0 }
 0x55c   : > { %v1837_v58 = vadd.f32 %v3957_v6, %v1788_v27  ;;  %v1823_v49 = vpop.permute.xlu0 %1822  ;;  %v1883_v53 = vsel %vm1851_vm15, %v1835_v33, %v1867_v13 }
 0x55d   : > { %v4000_v52 = vadd.f32 %v3179_v8, %v1883_v53  ;;  %v1844_v54 = vadd.f32 %v3957_v6, %v1823_v49  ;;  %v1890_v9 = vsel %vm1858_vm2, %v1842_v22, %v1874_v32 }
 0x55e   : > { %vm1853_vm1 = vcmp.gt.f32.partialorder %v1837_v58, 0.0  ;;  %v1869_v31 = vmul.f32 0.2, %v1837_v58  ;;  %v4022_v23 = vadd.f32 %v3184_v61, %v1890_v9 }
 0x55f   : > { %v1798_v55 = vpop.permute.xlu1 %1797  ;;  %1921 = vmax.xlane.f32.xlu0 %v4000_v52  ;;  %1927 = vmax.xlane.f32.xlu1 %v4003_v51  ;;  %v1876_v59 = vmul.f32 0.2, %v1844_v54  ;;  %vm1860_vm4 = vcmp.gt.f32.partialorder %v1844_v54, 0.0 }
 0x560   : > { %v1839_v2 = vadd.f32 %v3957_v6, %v1798_v55  ;;  %v1885_v36 = vsel %vm1853_vm1, %v1837_v58, %v1869_v31 }
 0x561   : > { %v4010_v20 = vadd.f32 %v3181_v11, %v1885_v36  ;;  %v1892_v37 = vsel %vm1860_vm4, %v1844_v54, %v1876_v59 }
 0x562   : > { %vm1855_vm3 = vcmp.gt.f32.partialorder %v1839_v2, 0.0  ;;  %v1871_v42 = vmul.f32 0.2, %v1839_v2  ;;  %v4031_v39 = vadd.f32 %v3186_v12, %v1892_v37 }
 0x563   : > { %v1808_v50 = vpop.permute.xlu1 %1807  ;;  %1925 = vmax.xlane.f32.xlu0 %v4010_v20  ;;  %1931 = vmax.xlane.f32.xlu1 %v4013_v41 }
 0x564   : > { %v1841_v57 = vadd.f32 %v3957_v6, %v1808_v50  ;;  %v1887_v30 = vsel %vm1855_vm3, %v1839_v2, %v1871_v42 }
 0x565   : > { %v4019_v15 = vadd.f32 %v3183_v34, %v1887_v30 }
 0x566   : > { %vm1857_vm0 = vcmp.gt.f32.partialorder %v1841_v57, 0.0  ;;  %v1873_v4 = vmul.f32 0.2, %v1841_v57 }
 0x567   : > { %1929 = vmax.xlane.f32.xlu0 %v4019_v15  ;;  %1935 = vmax.xlane.f32.xlu1 %v4022_v23  ;;  %v1818_v60 = vpop.permute.xlu1 %1817 }
 0x568   : > { %v1843_v14 = vadd.f32 %v3957_v6, %v1818_v60  ;;  %v1889_v18 = vsel %vm1857_vm0, %v1841_v57, %v1873_v4 }
 0x569   : > { %v4028_v26 = vadd.f32 %v3185_v21, %v1889_v18 }
 0x56a   : > { %vm1859_vm5 = vcmp.gt.f32.partialorder %v1843_v14, 0.0  ;;  %v1875_v62 = vmul.f32 0.2, %v1843_v14 }
 0x56b   : > { %1933 = vmax.xlane.f32.xlu0 %v4028_v26  ;;  %1939 = vmax.xlane.f32.xlu1 %v4031_v39 }
 0x56c   : > { %v1891_v48 = vsel %vm1859_vm5, %v1843_v14, %v1875_v62 }
 0x56d   : > { %v4036_v46 = vadd.f32 %v3187_v56, %v1891_v48 }
 0x56f   : > { %1937 = vmax.xlane.f32.xlu0 %v4036_v46 }
 0x5d4   : > { %v1912_v6 = vpop.xlane.xlu0 %1911 }
 0x5d5   : > { %v1942_v10 = vsub.f32 %v3963_v5, %v1912_v6  ;;  %v1910_v1 = vpop.xlane.xlu1 %1909 }
 0x5d6   : > { %v1941_v28 = vsub.f32 %v3966_v29, %v1910_v1 }
 0x5d7   : > { %v1959_v45 = vmul.f32 1.442695, %v1942_v10 }
 0x5d8   : > { %v1957_v25 = vmul.f32 1.442695, %v1941_v28 }
 0x5d9   : > { %3108 = vpow2.f32 %v1959_v45  ;;  %v1916_v19 = vpop.xlane.xlu1 %1915 }
 0x5da   : > { %3110 = vpow2.f32 %v1957_v25  ;;  %v1944_v33 = vsub.f32 %v3972_v40, %v1916_v19 }
 0x5dc   : > { %v1963_v17 = vmul.f32 1.442695, %v1944_v33  ;;  %v1914_v47 = vpop.xlane.xlu0 %1913 }
 0x5dd   : > { %v1943_v43 = vsub.f32 %v3977_v44, %v1914_v47 }
 0x5de   : > { %3112 = vpow2.f32 %v1963_v17 }
 0x5df   : > { %v1961_v7 = vmul.f32 1.442695, %v1943_v43 }
 0x5e0   : > { %v1920_v63 = vpop.xlane.xlu1 %1919 }
 0x5e1   : > { %3114 = vpow2.f32 %v1961_v7  ;;  %v1946_v5 = vsub.f32 %v3983_v35, %v1920_v63 }
 0x5e3   : > { %v4044_v13 = vpop.eup %3108  ;;  %v1967_v29 = vmul.f32 1.442695, %v1946_v5 }
 0x5e4   : > { %v4046_v22 = vpop.eup %3110  ;;  %v1918_v27 = vpop.xlane.xlu0 %1917  ;;  %1991 = vadd.xlane.f32.xlu1 %v4044_v13 }
 0x5e5   : > { %3116 = vpow2.f32 %v1967_v29  ;;  %v1945_v40 = vsub.f32 %v3989_v0, %v1918_v27  ;;  %1989 = vadd.xlane.f32.xlu0 %v4046_v22 }
 0x5e7   : > { %v1965_v44 = vmul.f32 1.442695, %v1945_v40 }
 0x5e8   : > { %v4051_v58 = vpop.eup %3112  ;;  %v1924_v49 = vpop.xlane.xlu1 %1923 }
 0x5e9   : > { %3118 = vpow2.f32 %v1965_v44  ;;  %v1948_v35 = vsub.f32 %v3994_v16, %v1924_v49  ;;  %1995 = vadd.xlane.f32.xlu1 %v4051_v58 }
 0x5eb   : > { %v4055_v53 = vpop.eup %3114  ;;  %v1971_v8 = vmul.f32 1.442695, %v1948_v35 }
 0x5ec   : > { %v1922_v3 = vpop.xlane.xlu0 %1921  ;;  %1993 = vadd.xlane.f32.xlu0 %v4055_v53  ;;  %v1928_v38 = vpop.xlane.xlu1 %1927 }
 0x5ed   : > { %3120 = vpow2.f32 %v1971_v8  ;;  %v1947_v0 = vsub.f32 %v4000_v52, %v1922_v3  ;;  %v1950_v32 = vsub.f32 %v4003_v51, %v1928_v38 }
 0x5ef   : > { %v4060_v31 = vpop.eup %3116  ;;  %v1969_v54 = vmul.f32 1.442695, %v1947_v0  ;;  %v1975_v55 = vmul.f32 1.442695, %v1950_v32 }
 0x5f0   : > { %v1926_v2 = vpop.xlane.xlu0 %1925  ;;  %1999 = vadd.xlane.f32.xlu1 %v4060_v31  ;;  %v1932_v16 = vpop.xlane.xlu1 %1931 }
 0x5f1   : > { %3122 = vpow2.f32 %v1969_v54  ;;  %v1949_v36 = vsub.f32 %v4010_v20, %v1926_v2  ;;  %v1952_v11 = vsub.f32 %v4013_v41, %v1932_v16 }
 0x5f2   : > { %3124 = vpow2.f32 %v1975_v55 }
 0x5f3   : > { %v4065_v24 = vpop.eup %3118  ;;  %v1973_v59 = vmul.f32 1.442695, %v1949_v36  ;;  %v1979_v52 = vmul.f32 1.442695, %v1952_v11 }
 0x5f4   : > { %v1930_v42 = vpop.xlane.xlu0 %1929  ;;  %1997 = vadd.xlane.f32.xlu0 %v4065_v24  ;;  %v1936_v51 = vpop.xlane.xlu1 %1935 }
 0x5f5   : > { %3126 = vpow2.f32 %v1973_v59  ;;  %v1951_v9 = vsub.f32 %v4019_v15, %v1930_v42  ;;  %v1954_v50 = vsub.f32 %v4022_v23, %v1936_v51 }
 0x5f6   : > { %3128 = vpow2.f32 %v1979_v52 }
 0x5f7   : > { %v4070_v57 = vpop.eup %3120  ;;  %v1977_v20 = vmul.f32 1.442695, %v1951_v9  ;;  %v1983_v30 = vmul.f32 1.442695, %v1954_v50 }
 0x5f8   : > { %v1934_v41 = vpop.xlane.xlu0 %1933  ;;  %2003 = vadd.xlane.f32.xlu1 %v4070_v57  ;;  %v1940_v34 = vpop.xlane.xlu1 %1939 }
 0x5f9   : > { %3130 = vpow2.f32 %v1977_v20  ;;  %v1953_v61 = vsub.f32 %v4028_v26, %v1934_v41  ;;  %v1956_v4 = vsub.f32 %v4031_v39, %v1940_v34 }
 0x5fa   : > { %3132 = vpow2.f32 %v1983_v30 }
 0x5fb   : > { %v4075_v37 = vpop.eup %3122  ;;  %v1981_v15 = vmul.f32 1.442695, %v1953_v61  ;;  %v1987_v60 = vmul.f32 1.442695, %v1956_v4  ;;  %v2376_v61 = vld [vmem:[%s4161_s3 + $0x10] ss:$0 sm:$0xff] }
 0x5fc   : > { %v4077_v23 = vpop.eup %3124  ;;  %v1938_v14 = vpop.xlane.xlu0 %1937  ;;  %2001 = vadd.xlane.f32.xlu0 %v4075_v37 }
 0x5fd   : > { %3134 = vpow2.f32 %v1981_v15  ;;  %v1955_v18 = vsub.f32 %v4036_v46, %v1938_v14  ;;  %2007 = vadd.xlane.f32.xlu1 %v4077_v23 }
 0x5fe   : > { %3136 = vpow2.f32 %v1987_v60 }
 0x5ff   : > { %v4082_v21 = vpop.eup %3126  ;;  %v1985_v26 = vmul.f32 1.442695, %v1955_v18 }
 0x600   : > { %v4084_v12 = vpop.eup %3128  ;;  %2005 = vadd.xlane.f32.xlu0 %v4082_v21 }
 0x601   : > { %3138 = vpow2.f32 %v1985_v26  ;;  %2011 = vadd.xlane.f32.xlu1 %v4084_v12 }
 0x603   : > { %v4088_v39 = vpop.eup %3130 }
 0x604   : > { %v4090_v62 = vpop.eup %3132  ;;  %2009 = vadd.xlane.f32.xlu0 %v4088_v39 }
 0x605   : > { %2015 = vadd.xlane.f32.xlu1 %v4090_v62 }
 0x607   : > { %v4094_v48 = vpop.eup %3134 }
 0x608   : > { %v4096_v56 = vpop.eup %3136  ;;  %2013 = vadd.xlane.f32.xlu0 %v4094_v48 }
 0x609   : > { %2019 = vadd.xlane.f32.xlu1 %v4096_v56 }
 0x60b   : > { %v4100_v46 = vpop.eup %3138 }
 0x60c   : > { %2017 = vadd.xlane.f32.xlu0 %v4100_v46 }
 0x671   : > { %v1992_v6 = vpop.xlane.xlu1 %1991 }
 0x672   : > { %3140 = vrcp.f32 %v1992_v6  ;;  %v1990_v10 = vpop.xlane.xlu0 %1989 }
 0x673   : > { %3142 = vrcp.f32 %v1990_v10 }
 0x676   : > { %v1996_v1 = vpop.xlane.xlu1 %1995 }
 0x677   : > { %3144 = vrcp.f32 %v1996_v1 }
 0x679   : > { %v1994_v28 = vpop.xlane.xlu0 %1993 }
 0x67a   : > { %3146 = vrcp.f32 %v1994_v28 }
 0x67c   : > { %v3141_v45 = vpop.eup %3140 }
 0x67d   : > { %v3143_v25 = vpop.eup %3142  ;;  %v2000_v19 = vpop.xlane.xlu1 %1999  ;;  %v2038_v17 = vmul.f32 %v3141_v45, %v4044_v13 }
 0x67e   : > { %v2037_v33 = vmul.f32 %v3143_v25, %v4046_v22  ;;  %3148 = vrcp.f32 %v2000_v19 }
 0x680   : > { %2767 = vmatprep.mubr.f32.mxu0 %v2037_v33 }
 0x681   : > { %v1998_v47 = vpop.xlane.xlu0 %1997  ;;  %2768 = vmatmul.mubr.f32.vlgmr.msra.gmra.mrb[18].mxu0 %v2038_v17  ;;  %v3145_v43 = vpop.eup %3144 }
 0x682   : > { %3150 = vrcp.f32 %v1998_v47  ;;  %v2040_v29 = vmul.f32 %v3145_v43, %v4051_v58 }
 0x684   : > { %v3147_v7 = vpop.eup %3146 }
 0x685   : > { %v2004_v63 = vpop.xlane.xlu1 %2003  ;;  %v2039_v5 = vmul.f32 %v3147_v7, %v4055_v53 }
 0x686   : > { %3152 = vrcp.f32 %v2004_v63 }
 0x687   : > { %2770 = vmatprep.mubr.f32.mxu0 %v2039_v5 }
 0x688   : > { %2771 = vmatmul.mubr.f32.gmra.mrb[20].mxu0 %v2040_v29  ;;  %v3149_v40 = vpop.eup %3148 }
 0x689   : > { %v2002_v27 = vpop.xlane.xlu0 %2001  ;;  %v2042_v8 = vmul.f32 %v3149_v40, %v4060_v31 }
 0x68a   : > { %3154 = vrcp.f32 %v2002_v27  ;;  %v2008_v22 = vpop.xlane.xlu1 %2007 }
 0x68b   : > { %3156 = vrcp.f32 %v2008_v22 }
 0x68c   : > { %v3151_v13 = vpop.eup %3150 }
 0x68d   : > { %v2006_v44 = vpop.xlane.xlu0 %2005  ;;  %v2041_v49 = vmul.f32 %v3151_v13, %v4065_v24 }
 0x68e   : > { %3158 = vrcp.f32 %v2006_v44  ;;  %v2012_v35 = vpop.xlane.xlu1 %2011 }
 0x68f   : > { %2773 = vmatprep.mubr.f32.mxu0 %v2041_v49  ;;  %3160 = vrcp.f32 %v2012_v35 }
 0x690   : > { %2774 = vmatmul.mubr.f32.gmra.mrb[22].mxu0 %v2042_v8  ;;  %v3153_v3 = vpop.eup %3152 }
 0x691   : > { %v2010_v58 = vpop.xlane.xlu0 %2009  ;;  %v2044_v55 = vmul.f32 %v3153_v3, %v4070_v57 }
 0x692   : > { %3162 = vrcp.f32 %v2010_v58  ;;  %v2016_v53 = vpop.xlane.xlu1 %2015 }
 0x693   : > { %3164 = vrcp.f32 %v2016_v53 }
 0x694   : > { %v3155_v38 = vpop.eup %3154 }
 0x695   : > { %v2014_v0 = vpop.xlane.xlu0 %2013  ;;  %v2043_v32 = vmul.f32 %v3155_v38, %v4075_v37  ;;  %v3157_v2 = vpop.eup %3156 }
 0x696   : > { %3166 = vrcp.f32 %v2014_v0  ;;  %v2020_v54 = vpop.xlane.xlu1 %2019  ;;  %v2046_v11 = vmul.f32 %v3157_v2, %v4077_v23 }
 0x697   : > { %2776 = vmatprep.mubr.f32.mxu0 %v2043_v32  ;;  %3168 = vrcp.f32 %v2020_v54 }
 0x698   : > { %v3159_v16 = vpop.eup %3158  ;;  %2777 = vmatmul.mubr.f32.gmra.mrb[24].mxu0 %v2044_v55 }
 0x699   : > { %v2018_v31 = vpop.xlane.xlu0 %2017  ;;  %v2045_v36 = vmul.f32 %v3159_v16, %v4082_v21  ;;  %v3161_v24 = vpop.eup %3160 }
 0x69a   : > { %3170 = vrcp.f32 %v2018_v31  ;;  %v2048_v42 = vmul.f32 %v3161_v24, %v4084_v12 }
 0x69b   : > { %2779 = vmatprep.mubr.f32.mxu0 %v2045_v36 }
 0x69c   : > { %v3163_v59 = vpop.eup %3162  ;;  %2780 = vmatmul.mubr.f32.gmra.mrb[26].mxu0 %v2046_v11 }
 0x69d   : > { %v2047_v52 = vmul.f32 %v3163_v59, %v4088_v39  ;;  %v3165_v51 = vpop.eup %3164 }
 0x69e   : > { %v2050_v57 = vmul.f32 %v3165_v51, %v4090_v62 }
 0x69f   : > { %2782 = vmatprep.mubr.f32.mxu0 %v2047_v52 }
 0x6a0   : > { %v3167_v9 = vpop.eup %3166  ;;  %2783 = vmatmul.mubr.f32.gmra.mrb[28].mxu0 %v2048_v42 }
 0x6a1   : > { %v2049_v50 = vmul.f32 %v3167_v9, %v4094_v48  ;;  %v3169_v20 = vpop.eup %3168 }
 0x6a2   : > { %v2052_v34 = vmul.f32 %v3169_v20, %v4096_v56 }
 0x6a3   : > { %2785 = vmatprep.mubr.f32.mxu0 %v2049_v50 }
 0x6a4   : > { %v3171_v30 = vpop.eup %3170  ;;  %2786 = vmatmul.mubr.f32.gmra.mrb[30].mxu0 %v2050_v57 }
 0x6a5   : > { %v2051_v41 = vmul.f32 %v3171_v30, %v4100_v46 }
 0x6a7   : > { %2788 = vmatprep.mubr.f32.mxu0 %v2051_v41 }
 0x6a8   : > { %2789 = vmatmul.mubr.f32.gmra.mrb[32].mxu0 %v2052_v34 }
 0x754   : > { %v2769_v4 = vpop.f32.mrb[18].mxu0 }
 0x755   : > { %v2129_v37 = vadd.f32 %v2769_v4, %v2376_v61  ;;  %v2123_v15 = vpop.f32.mrb[19].mxu0 }
 0x756   : > { %v2124_v60 = vadd.f32 %v2376_v61, %v2123_v15 }
 0x757   : > { %2203 = vst [vmem:[%s4127_s30 + $0x8] sm:$0xff] %v2129_v37 }
 0x758   : > { %2202 = vst [vmem:[%s4127_s30] sm:$0xff] %v2124_v60 }
 0x75b   : > { %v2772_v23 = vpop.f32.mrb[20].mxu0 }
 0x75c   : > { %v2139_v14 = vadd.f32 %v2772_v23, %v2376_v61  ;;  %v2133_v18 = vpop.f32.mrb[21].mxu0 }
 0x75d   : > { %v2134_v21 = vadd.f32 %v2376_v61, %v2133_v18 }
 0x75e   : > { %2205 = vst [vmem:[%s4127_s30 + $0x18] sm:$0xff] %v2139_v14 }
 0x75f   : > { %2204 = vst [vmem:[%s4127_s30 + $0x10] sm:$0xff] %v2134_v21 }
 0x763   : > { %v2775_v26 = vpop.f32.mrb[22].mxu0 }
 0x764   : > { %v2149_v12 = vadd.f32 %v2775_v26, %v2376_v61  ;;  %v2143_v39 = vpop.f32.mrb[23].mxu0 }
 0x765   : > { %v2144_v62 = vadd.f32 %v2376_v61, %v2143_v39 }
 0x766   : > { %2207 = vst [vmem:[%s4127_s30 + $0x28] sm:$0xff] %v2149_v12 }
 0x767   : > { %2206 = vst [vmem:[%s4127_s30 + $0x20] sm:$0xff] %v2144_v62 }
 0x76b   : > { %v2778_v48 = vpop.f32.mrb[24].mxu0 }
 0x76c   : > { %v2159_v56 = vadd.f32 %v2778_v48, %v2376_v61  ;;  %v2153_v46 = vpop.f32.mrb[25].mxu0 }
 0x76d   : > { %v2154_v6 = vadd.f32 %v2376_v61, %v2153_v46 }
 0x76e   : > { %2209 = vst [vmem:[%s4127_s30 + $0x38] sm:$0xff] %v2159_v56 }
 0x76f   : > { %2208 = vst [vmem:[%s4127_s30 + $0x30] sm:$0xff] %v2154_v6  ;;  %v2781_v10 = vpop.f32.mrb[26].mxu0 }
 0x770   : > { %v2169_v1 = vadd.f32 %v2781_v10, %v2376_v61  ;;  %v2163_v28 = vpop.f32.mrb[27].mxu0 }
 0x771   : > { %v2164_v45 = vadd.f32 %v2376_v61, %v2163_v28 }
 0x772   : > { %2211 = vst [vmem:[%s4127_s30 + $0x48] sm:$0xff] %v2169_v1 }
 0x773   : > { %2210 = vst [vmem:[%s4127_s30 + $0x40] sm:$0xff] %v2164_v45  ;;  %v2784_v25 = vpop.f32.mrb[28].mxu0 }
 0x774   : > { %v2179_v19 = vadd.f32 %v2784_v25, %v2376_v61  ;;  %v2173_v33 = vpop.f32.mrb[29].mxu0 }
 0x775   : > { %v2174_v17 = vadd.f32 %v2376_v61, %v2173_v33 }
 0x776   : > { %2213 = vst [vmem:[%s4127_s30 + $0x58] sm:$0xff] %v2179_v19 }
 0x777   : > { %2212 = vst [vmem:[%s4127_s30 + $0x50] sm:$0xff] %v2174_v17  ;;  %v2787_v47 = vpop.f32.mrb[30].mxu0 }
 0x778   : > { %v2189_v43 = vadd.f32 %v2787_v47, %v2376_v61  ;;  %v2183_v7 = vpop.f32.mrb[31].mxu0 }
 0x779   : > { %v2184_v63 = vadd.f32 %v2376_v61, %v2183_v7 }
 0x77a   : > { %2215 = vst [vmem:[%s4127_s30 + $0x68] sm:$0xff] %v2189_v43 }
 0x77b   : > { %2214 = vst [vmem:[%s4127_s30 + $0x60] sm:$0xff] %v2184_v63  ;;  %v2790_v5 = vpop.f32.mrb[32].mxu0 }
 0x77c   : > { %v2199_v29 = vadd.f32 %v2790_v5, %v2376_v61  ;;  %v2193_v27 = vpop.f32.mrb[33].mxu0 }
 0x77d   : > { %v2194_v22 = vadd.f32 %v2376_v61, %v2193_v27 }
 0x77e   : > { %2217 = vst [vmem:[%s4127_s30 + $0x78] sm:$0xff] %v2199_v29 }
 0x77f   : > { %2216 = vst [vmem:[%s4127_s30 + $0x70] sm:$0xff] %v2194_v22 }
 0x780 PF: > { %p14_p7 = scmp.ge.s32.totalorder %s3310_s20, 4   ;;  %s4170_s15 = smov %s3244_s16 }
 0x781   : > { %s4171_s16 = smov %s3248_s17  ;;  %s4172_s17 = smov %s3320_s23 }
 0x782   : > { %s4173_s18 = smov %s3310_s20  ;;  %16 = sbr.rel (!%p14_p7) target bundleno = 3 (0x3), region = 79 }
 0x789   :  { %2239 = vsyncpa [#allocation3], 1 }
 0x78a   :  { %2241 = vsyncpa [#allocation3 + $0x1], 1 }

</bundles_post_ra>
